<compile_context>
chip_gen: v7x
topology: tpu7x:2x2x1
jax: 0.10.0
libtpu: 0.0.40
codegen_flags: <defaults>
</compile_context>

<pallas_src>
import functools
import math

import jax
import jax.numpy as jnp
from jax.experimental import pallas as pl
from jax.experimental.pallas import tpu as pltpu


PARAM_ORDER = [
    "wg0", "bg0", "wb0", "bb0",          # ConditionalLayerNorm 0 (gamma / beta linears)
    "wq", "bq", "wk", "bk", "wv", "bv",  # MHA in-projections
    "wo", "bo",                          # MHA out-projection
    "wr0", "br0",                        # Rescale 0
    "wg1", "bg1", "wb1", "bb1",          # ConditionalLayerNorm 1
    "w1", "b1", "w2", "b2",              # PositionwiseFeedForward
    "wr1", "br1",                        # Rescale 1
]


def _encoder_block_kernel(
    n_heads,
    x_ref,        # (Nb, S, D)  f32   block of Nb batch elements
    cp_ref,       # (Nb, 6, D)  f32   [gamma0, beta0, r0, gamma1, beta1, r1] from wrapper GEMM
    wqkv_ref,     # (D, 3D)     bf16  fused Q|K|V projection (Q columns pre-scaled by 1/sqrt(hd))
    bqkv_ref,     # (1, 3D)     f32   (Q part pre-scaled)
    wo_ref,       # (D, D)      bf16
    bo_ref,       # (1, D)      f32
    w1_ref,       # (D, dff)    bf16
    b1_ref,       # (1, dff)    f32
    w2_ref,       # (dff, D)    bf16
    b2_ref,       # (1, D)      f32
    o_ref,        # (Nb, S, D)  f32
):
    Nb, S, D = x_ref.shape
    H = n_heads
    hd = D // H
    M = Nb * S

    x = x_ref[...]                                    # (Nb, S, D) f32
    cp = cp_ref[...]                                  # (Nb, 6, D) f32
    g0, be0, r0 = cp[:, 0:1, :], cp[:, 1:2, :], cp[:, 2:3, :]
    g1, be1, r1 = cp[:, 3:4, :], cp[:, 4:5, :], cp[:, 5:6, :]

    def ln(z):  # LayerNorm, no affine, eps=1e-5, biased variance (PyTorch semantics), f32
        mu = jnp.mean(z, axis=-1, keepdims=True)
        zc = z - mu
        var = jnp.mean(zc * zc, axis=-1, keepdims=True)
        return zc * jax.lax.rsqrt(var + 1e-5)

    # --- conditional layer norm 0 ---
    h0 = g0 * ln(x) + be0                             # (Nb, S, D) f32

    # --- fused QKV projection: one (M,D)x(D,3D) MXU matmul (softmax scale folded into Q) ---
    qkv = jnp.dot(h0.reshape(M, D).astype(jnp.bfloat16), wqkv_ref[...],
                  preferred_element_type=jnp.float32) + bqkv_ref[...]        # (M, 3D) f32

    # --- head split: one reshape + one transpose (no per-head lane slices / stack) ---
    qkv4 = jnp.transpose(qkv.astype(jnp.bfloat16).reshape(Nb, S, 3 * H, hd),
                         (0, 2, 1, 3))                # (Nb, 3H, S, hd) bf16
    q = qkv4[:, 0:H].reshape(Nb * H, S, hd)
    k = qkv4[:, H:2 * H].reshape(Nb * H, S, hd)
    v = qkv4[:, 2 * H:3 * H].reshape(Nb * H, S, hd)

    # --- attention, batched over (Nb*H) as one leading batch axis ---
    s = jnp.einsum("bqd,bkd->bqk", q, k,
                   preferred_element_type=jnp.float32)                        # (Nb*H, S, S) f32
    s = s - jnp.max(s, axis=-1, keepdims=True)
    p = jnp.exp(s)
    p = p * pl.reciprocal(jnp.sum(p, axis=-1, keepdims=True), approx=True)
    ctx = jnp.einsum("bqk,bkd->bqd", p.astype(jnp.bfloat16), v,
                     preferred_element_type=jnp.float32)                      # (Nb*H, S, hd) f32

    # --- merge heads (one transpose + reshape) and fold the concat into the out-proj GEMM ---
    ctx2d = jnp.transpose(ctx.astype(jnp.bfloat16).reshape(Nb, H, S, hd),
                          (0, 2, 1, 3)).reshape(M, D)                         # (M, D) bf16
    att = jnp.dot(ctx2d, wo_ref[...],
                  preferred_element_type=jnp.float32) + bo_ref[...]           # (M, D) f32
    att = att.reshape(Nb, S, D)

    # --- rescale 0 + residual. PyTorch semantics: residual is the CLN0 output h0, not x. ---
    x1 = h0 + att * r0

    # --- conditional layer norm 1 + position-wise feed forward ---
    h1 = g1 * ln(x1) + be1
    ff = jnp.dot(h1.reshape(M, D).astype(jnp.bfloat16), w1_ref[...],
                 preferred_element_type=jnp.float32) + b1_ref[...]
    ff = jnp.maximum(ff, 0.0).astype(jnp.bfloat16)
    ff = jnp.dot(ff, w2_ref[...],
                 preferred_element_type=jnp.float32) + b2_ref[...]
    ff = ff.reshape(Nb, S, D)

    # --- rescale 1 + residual. PyTorch semantics: residual is the CLN1 output h1. ---
    o_ref[...] = h1 + ff * r1


def _pick_block_batch(N, S, D, H, dff):
    """Largest divisor of N whose per-step f32 activations fit a conservative VMEM budget."""
    budget = 24 * 1024 * 1024
    best = 1
    for nb in range(1, N + 1):
        if N % nb:
            continue
        act_bytes = nb * (H * S * S + S * dff + 3 * S * D + 12 * S * D) * 4
        if act_bytes <= budget and nb * S <= 4096:
            best = nb
    return best


def encoder_block_conditional(x, cond, params, n_heads, block_batch=None):
    N, S, D = x.shape
    H = n_heads
    hd = D // H
    p = params
    dff = p["w1"].shape[1]

    # Hoisted condition-only linears: one (N,C)x(C,6D) GEMM in the wrapper -> (N, 6, D).
    wc = jnp.concatenate(
        [p["wg0"], p["wb0"], p["wr0"], p["wg1"], p["wb1"], p["wr1"]], axis=1)   # (C, 6D)
    bc = jnp.concatenate(
        [p["bg0"], p["bb0"], p["br0"], p["bg1"], p["bb1"], p["br1"]], axis=1)   # (1, 6D)
    cond_proj = (cond.astype(jnp.float32) @ wc + bc).reshape(N, 6, D)

    # Fused QKV weight with the 1/sqrt(hd) softmax scale folded into the Q columns.
    scale = 1.0 / math.sqrt(hd)
    wqkv = jnp.concatenate([p["wq"] * scale, p["wk"], p["wv"]], axis=1).astype(jnp.bfloat16)
    bqkv = jnp.concatenate([p["bq"] * scale, p["bk"], p["bv"]], axis=1).astype(jnp.float32)
    weights = [
        wqkv, bqkv,
        p["wo"].astype(jnp.bfloat16), p["bo"].astype(jnp.float32),
        p["w1"].astype(jnp.bfloat16), p["b1"].astype(jnp.float32),
        p["w2"].astype(jnp.bfloat16), p["b2"].astype(jnp.float32),
    ]

    Nb = block_batch if block_batch is not None else _pick_block_batch(N, S, D, H, dff)
    assert N % Nb == 0, "block_batch must divide the batch size"

    # VMEM budget from actually-resident data (weights double-buffered by default pipelining,
    # IO blocks double-buffered, f32 activations), capped below v7x's 64 MiB physical VMEM.
    weight_bytes = sum(int(w.size) * w.dtype.itemsize for w in weights)
    io_bytes = (2 * Nb * S * D + Nb * 6 * D) * 4
    act_bytes = Nb * (H * S * S + S * dff + 3 * S * D + 12 * S * D) * 4
    vmem_limit = 2 * weight_bytes + 2 * io_bytes + 2 * act_bytes + (4 << 20)
    vmem_limit = int(min(max(vmem_limit, 16 << 20), 56 << 20))

    kernel = functools.partial(_encoder_block_kernel, n_heads)

    def const_spec(a):
        nd = a.ndim
        # Grid-invariant weights: constant index_map, so they are not re-fetched per step.
        return pl.BlockSpec(a.shape, lambda b: (0,) * nd)

    in_specs = [
        pl.BlockSpec((Nb, S, D), lambda b: (b, 0, 0)),   # x block (Nb batch elements per step)
        pl.BlockSpec((Nb, 6, D), lambda b: (b, 0, 0)),   # condition projections
    ] + [const_spec(w) for w in weights]
    out_spec = pl.BlockSpec((Nb, S, D), lambda b: (b, 0, 0))

    call = pl.pallas_call(
        kernel,
        out_shape=jax.ShapeDtypeStruct((N, S, D), jnp.float32),
        grid_spec=pltpu.PrefetchScalarGridSpec(
            num_scalar_prefetch=0,
            grid=(N // Nb,),
            in_specs=in_specs,
            out_specs=out_spec,
        ),
        compiler_params=pltpu.CompilerParams(
            dimension_semantics=("parallel",),
            vmem_limit_bytes=vmem_limit,
        ),
    )
    return call(x.astype(jnp.float32), cond_proj, *weights)


def reference(x, cond, p, n_heads):
    """Pure-JAX f32 reference matching the PyTorch forward (eval mode, x reassigned after LN)."""
    N, S, D = x.shape
    hd = D // n_heads

    def ln(z):
        mu = jnp.mean(z, -1, keepdims=True)
        var = jnp.mean((z - mu) ** 2, -1, keepdims=True)
        return (z - mu) * jax.lax.rsqrt(var + 1e-5)

    def lin(v, w, b):
        return v @ w + b

    gamma0 = lin(cond, p["wg0"], p["bg0"])[:, None, :]
    beta0 = lin(cond, p["wb0"], p["bb0"])[:, None, :]
    h0 = gamma0 * ln(x) + beta0

    q = lin(h0, p["wq"], p["bq"]).reshape(N, S, n_heads, hd).transpose(0, 2, 1, 3)
    k = lin(h0, p["wk"], p["bk"]).reshape(N, S, n_heads, hd).transpose(0, 2, 1, 3)
    v = lin(h0, p["wv"], p["bv"]).reshape(N, S, n_heads, hd).transpose(0, 2, 1, 3)
    s = jnp.einsum("nhqd,nhkd->nhqk", q, k) / math.sqrt(hd)
    a = jax.nn.softmax(s, axis=-1)
    att = jnp.einsum("nhqk,nhkd->nhqd", a, v).transpose(0, 2, 1, 3).reshape(N, S, D)
    att = lin(att, p["wo"], p["bo"])

    r0 = lin(cond, p["wr0"], p["br0"])[:, None, :]
    x1 = h0 + att * r0                                 # residual from CLN0 output (PyTorch)

    gamma1 = lin(cond, p["wg1"], p["bg1"])[:, None, :]
    beta1 = lin(cond, p["wb1"], p["bb1"])[:, None, :]
    h1 = gamma1 * ln(x1) + beta1
    ff = lin(jax.nn.relu(lin(h1, p["w1"], p["b1"])), p["w2"], p["b2"])
    r1 = lin(cond, p["wr1"], p["br1"])[:, None, :]
    return h1 + ff * r1                                # residual from CLN1 output (PyTorch)


def make_params(key, d_model, d_ff, n_cond):
    shapes = {
        "wg0": (n_cond, d_model), "bg0": (1, d_model),
        "wb0": (n_cond, d_model), "bb0": (1, d_model),
        "wq": (d_model, d_model), "bq": (1, d_model),
        "wk": (d_model, d_model), "bk": (1, d_model),
        "wv": (d_model, d_model), "bv": (1, d_model),
        "wo": (d_model, d_model), "bo": (1, d_model),
        # Note: the PyTorch module zero-inits Rescale; small random values here so the
        # attention / FFN branches are actually exercised numerically.
        "wr0": (n_cond, d_model), "br0": (1, d_model),
        "wg1": (n_cond, d_model), "bg1": (1, d_model),
        "wb1": (n_cond, d_model), "bb1": (1, d_model),
        "w1": (d_model, d_ff), "b1": (1, d_ff),
        "w2": (d_ff, d_model), "b2": (1, d_model),
        "wr1": (n_cond, d_model), "br1": (1, d_model),
    }
    keys = jax.random.split(key, len(PARAM_ORDER))
    return {
        name: 0.1 * jax.random.normal(k, shapes[name], dtype=jnp.float32)
        for name, k in zip(PARAM_ORDER, keys)
    }


if __name__ == "__main__":
    batch, seq_len = 2, 8
    d_model, n_heads, d_ff, n_cond = 32, 4, 64, 8

    root = jax.random.PRNGKey(0)
    kx, kc, kp = jax.random.split(root, 3)
    x = jax.random.normal(kx, (batch, seq_len, d_model), dtype=jnp.float32)
    cond = jax.random.normal(kc, (batch, n_cond), dtype=jnp.float32)
    params = make_params(kp, d_model, d_ff, n_cond)

    out = encoder_block_conditional(x, cond, params, n_heads)
    out = jax.block_until_ready(out)

    ref = reference(x, cond, params, n_heads)
    assert out.shape == (batch, seq_len, d_model)
    # Tolerance vs. pure f32: matmul operands are bf16 (f32 accumulation) and the softmax
    # normalization uses the approximate EUP reciprocal.
    max_err = float(jnp.max(jnp.abs(out - ref)))
    assert jnp.allclose(out, ref, atol=2e-2, rtol=2e-2), (
        f"mismatch vs pure-JAX reference, max abs err {max_err}")

    print("KERNEL_OK")
</pallas_src>

<mosaic_0001>
module attributes {stable_mosaic.version = 11 : i64} {
  func.func @_encoder_block_kernel(%arg0: i32, %arg1: memref<2x8x32xf32, #tpu.memory_space<vmem>>, %arg2: memref<2x6x32xf32, #tpu.memory_space<vmem>>, %arg3: memref<32x96xbf16, #tpu.memory_space<vmem>>, %arg4: memref<1x96xf32, #tpu.memory_space<vmem>>, %arg5: memref<32x32xbf16, #tpu.memory_space<vmem>>, %arg6: memref<1x32xf32, #tpu.memory_space<vmem>>, %arg7: memref<32x64xbf16, #tpu.memory_space<vmem>>, %arg8: memref<1x64xf32, #tpu.memory_space<vmem>>, %arg9: memref<64x32xbf16, #tpu.memory_space<vmem>>, %arg10: memref<1x32xf32, #tpu.memory_space<vmem>>, %arg11: memref<2x8x32xf32, #tpu.memory_space<vmem>>) attributes {dimension_semantics = [#tpu.dimension_semantics<parallel>], iteration_bounds = array<i64: 1>, scalar_prefetch = 0 : i64, scratch_operands = 0 : i64, tpu.core_type = #tpu.core_type<tc>, window_params = [{transform_indices = @transform_0, window_bounds = array<i64: 2, 8, 32>}, {transform_indices = @transform_1, window_bounds = array<i64: 2, 6, 32>}, {pipeline_mode = #tpu.pipeline_mode<synchronous>, transform_indices = @transform_2, window_bounds = array<i64: 32, 96>}, {pipeline_mode = #tpu.pipeline_mode<synchronous>, transform_indices = @transform_3, window_bounds = array<i64: 1, 96>}, {pipeline_mode = #tpu.pipeline_mode<synchronous>, transform_indices = @transform_4, window_bounds = array<i64: 32, 32>}, {pipeline_mode = #tpu.pipeline_mode<synchronous>, transform_indices = @transform_5, window_bounds = array<i64: 1, 32>}, {pipeline_mode = #tpu.pipeline_mode<synchronous>, transform_indices = @transform_6, window_bounds = array<i64: 32, 64>}, {pipeline_mode = #tpu.pipeline_mode<synchronous>, transform_indices = @transform_7, window_bounds = array<i64: 1, 64>}, {pipeline_mode = #tpu.pipeline_mode<synchronous>, transform_indices = @transform_8, window_bounds = array<i64: 64, 32>}, {pipeline_mode = #tpu.pipeline_mode<synchronous>, transform_indices = @transform_9, window_bounds = array<i64: 1, 32>}, {transform_indices = @transform_10, window_bounds = array<i64: 2, 8, 32>}]} {
    %c0 = arith.constant 0 : index
    %c0_0 = arith.constant 0 : index
    %c0_1 = arith.constant 0 : index
    %0 = vector.load %arg1[%c0, %c0_0, %c0_1] : memref<2x8x32xf32, #tpu.memory_space<vmem>>, vector<2x8x32xf32>
    %c0_2 = arith.constant 0 : index
    %c0_3 = arith.constant 0 : index
    %c0_4 = arith.constant 0 : index
    %1 = vector.load %arg2[%c0_2, %c0_3, %c0_4] : memref<2x6x32xf32, #tpu.memory_space<vmem>>, vector<2x6x32xf32>
    %2 = vector.extract_strided_slice %1 {offsets = [0, 0, 0], sizes = [2, 1, 32], strides = [1, 1, 1]} : vector<2x6x32xf32> to vector<2x1x32xf32>
    %3 = vector.extract_strided_slice %1 {offsets = [0, 1, 0], sizes = [2, 1, 32], strides = [1, 1, 1]} : vector<2x6x32xf32> to vector<2x1x32xf32>
    %4 = vector.extract_strided_slice %1 {offsets = [0, 2, 0], sizes = [2, 1, 32], strides = [1, 1, 1]} : vector<2x6x32xf32> to vector<2x1x32xf32>
    %5 = vector.extract_strided_slice %1 {offsets = [0, 3, 0], sizes = [2, 1, 32], strides = [1, 1, 1]} : vector<2x6x32xf32> to vector<2x1x32xf32>
    %6 = vector.extract_strided_slice %1 {offsets = [0, 4, 0], sizes = [2, 1, 32], strides = [1, 1, 1]} : vector<2x6x32xf32> to vector<2x1x32xf32>
    %7 = vector.extract_strided_slice %1 {offsets = [0, 5, 0], sizes = [2, 1, 32], strides = [1, 1, 1]} : vector<2x6x32xf32> to vector<2x1x32xf32>
    %cst = arith.constant dense<0.000000e+00> : vector<2x8xf32>
    %8 = vector.multi_reduction <add>, %0, %cst [2] : vector<2x8x32xf32> to vector<2x8xf32>
    %9 = vector.shape_cast %8 : vector<2x8xf32> to vector<2x8x1xf32>
    %cst_5 = arith.constant 3.200000e+01 : f32
    %10 = vector.broadcast %cst_5 : f32 to vector<2x8x1xf32>
    %11 = arith.divf %9, %10 : vector<2x8x1xf32>
    %12 = vector.broadcast %11 : vector<2x8x1xf32> to vector<2x8x32xf32>
    %13 = arith.subf %0, %12 : vector<2x8x32xf32>
    %14 = arith.mulf %13, %13 : vector<2x8x32xf32>
    %cst_6 = arith.constant dense<0.000000e+00> : vector<2x8xf32>
    %15 = vector.multi_reduction <add>, %14, %cst_6 [2] : vector<2x8x32xf32> to vector<2x8xf32>
    %16 = vector.shape_cast %15 : vector<2x8xf32> to vector<2x8x1xf32>
    %cst_7 = arith.constant 3.200000e+01 : f32
    %17 = vector.broadcast %cst_7 : f32 to vector<2x8x1xf32>
    %18 = arith.divf %16, %17 : vector<2x8x1xf32>
    %cst_8 = arith.constant 9.99999974E-6 : f32
    %19 = vector.broadcast %cst_8 : f32 to vector<2x8x1xf32>
    %20 = arith.addf %18, %19 : vector<2x8x1xf32>
    %21 = math.rsqrt %20 : vector<2x8x1xf32>
    %22 = vector.broadcast %21 : vector<2x8x1xf32> to vector<2x8x32xf32>
    %23 = arith.mulf %13, %22 : vector<2x8x32xf32>
    %24 = vector.broadcast %2 : vector<2x1x32xf32> to vector<2x8x32xf32>
    %25 = arith.mulf %24, %23 : vector<2x8x32xf32>
    %26 = vector.broadcast %3 : vector<2x1x32xf32> to vector<2x8x32xf32>
    %27 = arith.addf %25, %26 : vector<2x8x32xf32>
    %28 = vector.shape_cast %27 : vector<2x8x32xf32> to vector<16x32xf32>
    %29 = arith.truncf %28 : vector<16x32xf32> to vector<16x32xbf16>
    %c0_9 = arith.constant 0 : index
    %c0_10 = arith.constant 0 : index
    %30 = vector.load %arg3[%c0_9, %c0_10] : memref<32x96xbf16, #tpu.memory_space<vmem>>, vector<32x96xbf16>
    %cst_11 = arith.constant dense<0.000000e+00> : vector<16x96xf32>
    %31 = tpu.matmul %29, %30, %cst_11 {dimension_numbers = #tpu.dot_dimension_numbers<[1], [0], [0], [1], [0, 0, 1, 1], [], []>} : vector<16x32xbf16>, vector<32x96xbf16>, vector<16x96xf32> -> vector<16x96xf32>
    %c0_12 = arith.constant 0 : index
    %c0_13 = arith.constant 0 : index
    %32 = vector.load %arg4[%c0_12, %c0_13] : memref<1x96xf32, #tpu.memory_space<vmem>>, vector<1x96xf32>
    %33 = vector.broadcast %32 : vector<1x96xf32> to vector<16x96xf32>
    %34 = arith.addf %31, %33 : vector<16x96xf32>
    %35 = arith.truncf %34 : vector<16x96xf32> to vector<16x96xbf16>
    %36 = vector.shape_cast %35 : vector<16x96xbf16> to vector<2x8x12x8xbf16>
    %37 = tpu.transpose %36, [0, 2, 1, 3] : vector<2x8x12x8xbf16> -> vector<2x12x8x8xbf16>
    %38 = vector.extract_strided_slice %37 {offsets = [0, 0, 0, 0], sizes = [2, 4, 8, 8], strides = [1, 1, 1, 1]} : vector<2x12x8x8xbf16> to vector<2x4x8x8xbf16>
    %39 = vector.shape_cast %38 : vector<2x4x8x8xbf16> to vector<8x8x8xbf16>
    %40 = vector.extract_strided_slice %37 {offsets = [0, 4, 0, 0], sizes = [2, 4, 8, 8], strides = [1, 1, 1, 1]} : vector<2x12x8x8xbf16> to vector<2x4x8x8xbf16>
    %41 = vector.shape_cast %40 : vector<2x4x8x8xbf16> to vector<8x8x8xbf16>
    %42 = vector.extract_strided_slice %37 {offsets = [0, 8, 0, 0], sizes = [2, 4, 8, 8], strides = [1, 1, 1, 1]} : vector<2x12x8x8xbf16> to vector<2x4x8x8xbf16>
    %43 = vector.shape_cast %42 : vector<2x4x8x8xbf16> to vector<8x8x8xbf16>
    "tpu.trace_start"() <{level = 10 : i32, message = "bqd,bkd->bqk"}> : () -> ()
    %cst_14 = arith.constant dense<0.000000e+00> : vector<8x8x8xf32>
    %44 = tpu.matmul %39, %41, %cst_14 {dimension_numbers = #tpu.dot_dimension_numbers<[2], [2], [1], [1], [0, 0, 0, 1, 1, 1], [0], [0]>} : vector<8x8x8xbf16>, vector<8x8x8xbf16>, vector<8x8x8xf32> -> vector<8x8x8xf32>
    "tpu.trace_stop"() : () -> ()
    %cst_15 = arith.constant dense<0xFF800000> : vector<8x8xf32>
    %45 = vector.multi_reduction <maximumf>, %44, %cst_15 [2] : vector<8x8x8xf32> to vector<8x8xf32>
    %46 = vector.shape_cast %45 : vector<8x8xf32> to vector<8x8x1xf32>
    %47 = vector.broadcast %46 : vector<8x8x1xf32> to vector<8x8x8xf32>
    %48 = arith.subf %44, %47 : vector<8x8x8xf32>
    %49 = math.exp %48 : vector<8x8x8xf32>
    %cst_16 = arith.constant dense<0.000000e+00> : vector<8x8xf32>
    %50 = vector.multi_reduction <add>, %49, %cst_16 [2] : vector<8x8x8xf32> to vector<8x8xf32>
    %51 = vector.shape_cast %50 : vector<8x8xf32> to vector<8x8x1xf32>
    %52 = tpu.reciprocal %51 {approx = true} : vector<8x8x1xf32> -> vector<8x8x1xf32>
    %53 = vector.broadcast %52 : vector<8x8x1xf32> to vector<8x8x8xf32>
    %54 = arith.mulf %49, %53 : vector<8x8x8xf32>
    %55 = arith.truncf %54 : vector<8x8x8xf32> to vector<8x8x8xbf16>
    "tpu.trace_start"() <{level = 10 : i32, message = "bqk,bkd->bqd"}> : () -> ()
    %cst_17 = arith.constant dense<0.000000e+00> : vector<8x8x8xf32>
    %56 = tpu.matmul %55, %43, %cst_17 {dimension_numbers = #tpu.dot_dimension_numbers<[2], [1], [1], [2], [0, 0, 0, 1, 1, 2], [0], [0]>} : vector<8x8x8xbf16>, vector<8x8x8xbf16>, vector<8x8x8xf32> -> vector<8x8x8xf32>
    "tpu.trace_stop"() : () -> ()
    %57 = arith.truncf %56 : vector<8x8x8xf32> to vector<8x8x8xbf16>
    %58 = vector.shape_cast %57 : vector<8x8x8xbf16> to vector<2x4x8x8xbf16>
    %59 = tpu.transpose %58, [0, 2, 1, 3] : vector<2x4x8x8xbf16> -> vector<2x8x4x8xbf16>
    %60 = vector.shape_cast %59 : vector<2x8x4x8xbf16> to vector<16x32xbf16>
    %c0_18 = arith.constant 0 : index
    %c0_19 = arith.constant 0 : index
    %61 = vector.load %arg5[%c0_18, %c0_19] : memref<32x32xbf16, #tpu.memory_space<vmem>>, vector<32x32xbf16>
    %cst_20 = arith.constant dense<0.000000e+00> : vector<16x32xf32>
    %62 = tpu.matmul %60, %61, %cst_20 {dimension_numbers = #tpu.dot_dimension_numbers<[1], [0], [0], [1], [0, 0, 1, 1], [], []>} : vector<16x32xbf16>, vector<32x32xbf16>, vector<16x32xf32> -> vector<16x32xf32>
    %c0_21 = arith.constant 0 : index
    %c0_22 = arith.constant 0 : index
    %63 = vector.load %arg6[%c0_21, %c0_22] : memref<1x32xf32, #tpu.memory_space<vmem>>, vector<1x32xf32>
    %64 = vector.broadcast %63 : vector<1x32xf32> to vector<16x32xf32>
    %65 = arith.addf %62, %64 : vector<16x32xf32>
    %66 = vector.shape_cast %65 : vector<16x32xf32> to vector<2x8x32xf32>
    %67 = vector.broadcast %4 : vector<2x1x32xf32> to vector<2x8x32xf32>
    %68 = arith.mulf %66, %67 : vector<2x8x32xf32>
    %69 = arith.addf %27, %68 : vector<2x8x32xf32>
    %cst_23 = arith.constant dense<0.000000e+00> : vector<2x8xf32>
    %70 = vector.multi_reduction <add>, %69, %cst_23 [2] : vector<2x8x32xf32> to vector<2x8xf32>
    %71 = vector.shape_cast %70 : vector<2x8xf32> to vector<2x8x1xf32>
    %cst_24 = arith.constant 3.200000e+01 : f32
    %72 = vector.broadcast %cst_24 : f32 to vector<2x8x1xf32>
    %73 = arith.divf %71, %72 : vector<2x8x1xf32>
    %74 = vector.broadcast %73 : vector<2x8x1xf32> to vector<2x8x32xf32>
    %75 = arith.subf %69, %74 : vector<2x8x32xf32>
    %76 = arith.mulf %75, %75 : vector<2x8x32xf32>
    %cst_25 = arith.constant dense<0.000000e+00> : vector<2x8xf32>
    %77 = vector.multi_reduction <add>, %76, %cst_25 [2] : vector<2x8x32xf32> to vector<2x8xf32>
    %78 = vector.shape_cast %77 : vector<2x8xf32> to vector<2x8x1xf32>
    %cst_26 = arith.constant 3.200000e+01 : f32
    %79 = vector.broadcast %cst_26 : f32 to vector<2x8x1xf32>
    %80 = arith.divf %78, %79 : vector<2x8x1xf32>
    %cst_27 = arith.constant 9.99999974E-6 : f32
    %81 = vector.broadcast %cst_27 : f32 to vector<2x8x1xf32>
    %82 = arith.addf %80, %81 : vector<2x8x1xf32>
    %83 = math.rsqrt %82 : vector<2x8x1xf32>
    %84 = vector.broadcast %83 : vector<2x8x1xf32> to vector<2x8x32xf32>
    %85 = arith.mulf %75, %84 : vector<2x8x32xf32>
    %86 = vector.broadcast %5 : vector<2x1x32xf32> to vector<2x8x32xf32>
    %87 = arith.mulf %86, %85 : vector<2x8x32xf32>
    %88 = vector.broadcast %6 : vector<2x1x32xf32> to vector<2x8x32xf32>
    %89 = arith.addf %87, %88 : vector<2x8x32xf32>
    %90 = vector.shape_cast %89 : vector<2x8x32xf32> to vector<16x32xf32>
    %91 = arith.truncf %90 : vector<16x32xf32> to vector<16x32xbf16>
    %c0_28 = arith.constant 0 : index
    %c0_29 = arith.constant 0 : index
    %92 = vector.load %arg7[%c0_28, %c0_29] : memref<32x64xbf16, #tpu.memory_space<vmem>>, vector<32x64xbf16>
    %cst_30 = arith.constant dense<0.000000e+00> : vector<16x64xf32>
    %93 = tpu.matmul %91, %92, %cst_30 {dimension_numbers = #tpu.dot_dimension_numbers<[1], [0], [0], [1], [0, 0, 1, 1], [], []>} : vector<16x32xbf16>, vector<32x64xbf16>, vector<16x64xf32> -> vector<16x64xf32>
    %c0_31 = arith.constant 0 : index
    %c0_32 = arith.constant 0 : index
    %94 = vector.load %arg8[%c0_31, %c0_32] : memref<1x64xf32, #tpu.memory_space<vmem>>, vector<1x64xf32>
    %95 = vector.broadcast %94 : vector<1x64xf32> to vector<16x64xf32>
    %96 = arith.addf %93, %95 : vector<16x64xf32>
    %cst_33 = arith.constant 0.000000e+00 : f32
    %97 = vector.broadcast %cst_33 : f32 to vector<16x64xf32>
    %98 = arith.maximumf %96, %97 : vector<16x64xf32>
    %99 = arith.truncf %98 : vector<16x64xf32> to vector<16x64xbf16>
    %c0_34 = arith.constant 0 : index
    %c0_35 = arith.constant 0 : index
    %100 = vector.load %arg9[%c0_34, %c0_35] : memref<64x32xbf16, #tpu.memory_space<vmem>>, vector<64x32xbf16>
    %cst_36 = arith.constant dense<0.000000e+00> : vector<16x32xf32>
    %101 = tpu.matmul %99, %100, %cst_36 {dimension_numbers = #tpu.dot_dimension_numbers<[1], [0], [0], [1], [0, 0, 1, 1], [], []>} : vector<16x64xbf16>, vector<64x32xbf16>, vector<16x32xf32> -> vector<16x32xf32>
    %c0_37 = arith.constant 0 : index
    %c0_38 = arith.constant 0 : index
    %102 = vector.load %arg10[%c0_37, %c0_38] : memref<1x32xf32, #tpu.memory_space<vmem>>, vector<1x32xf32>
    %103 = vector.broadcast %102 : vector<1x32xf32> to vector<16x32xf32>
    %104 = arith.addf %101, %103 : vector<16x32xf32>
    %105 = vector.shape_cast %104 : vector<16x32xf32> to vector<2x8x32xf32>
    %106 = vector.broadcast %7 : vector<2x1x32xf32> to vector<2x8x32xf32>
    %107 = arith.mulf %105, %106 : vector<2x8x32xf32>
    %108 = arith.addf %89, %107 : vector<2x8x32xf32>
    %c0_39 = arith.constant 0 : index
    %c0_40 = arith.constant 0 : index
    %c0_41 = arith.constant 0 : index
    %109 = vector.load %arg11[%c0_39, %c0_40, %c0_41] : memref<2x8x32xf32, #tpu.memory_space<vmem>>, vector<2x8x32xf32>
    tpu.vector_store %arg11[%c0_39, %c0_40, %c0_41], %108 {strides = array<i32>} : memref<2x8x32xf32, #tpu.memory_space<vmem>>, vector<2x8x32xf32>,
    return
  }
  func.func @transform_0(%arg0: i32) -> (i32, i32, i32) {
    %c0_i32 = arith.constant 0 : i32
    %c0_i32_0 = arith.constant 0 : i32
    %c0_i32_1 = arith.constant 0 : i32
    return %arg0, %c0_i32, %c0_i32_0 : i32, i32, i32
  }
  func.func @transform_1(%arg0: i32) -> (i32, i32, i32) {
    %c0_i32 = arith.constant 0 : i32
    %c0_i32_0 = arith.constant 0 : i32
    %c0_i32_1 = arith.constant 0 : i32
    return %arg0, %c0_i32, %c0_i32_0 : i32, i32, i32
  }
  func.func @transform_2(%arg0: i32) -> (i32, i32) {
    %c0_i32 = arith.constant 0 : i32
    %c0_i32_0 = arith.constant 0 : i32
    %c0_i32_1 = arith.constant 0 : i32
    return %c0_i32, %c0_i32_0 : i32, i32
  }
  func.func @transform_3(%arg0: i32) -> (i32, i32) {
    %c0_i32 = arith.constant 0 : i32
    %c0_i32_0 = arith.constant 0 : i32
    %c0_i32_1 = arith.constant 0 : i32
    return %c0_i32, %c0_i32_0 : i32, i32
  }
  func.func @transform_4(%arg0: i32) -> (i32, i32) {
    %c0_i32 = arith.constant 0 : i32
    %c0_i32_0 = arith.constant 0 : i32
    %c0_i32_1 = arith.constant 0 : i32
    return %c0_i32, %c0_i32_0 : i32, i32
  }
  func.func @transform_5(%arg0: i32) -> (i32, i32) {
    %c0_i32 = arith.constant 0 : i32
    %c0_i32_0 = arith.constant 0 : i32
    %c0_i32_1 = arith.constant 0 : i32
    return %c0_i32, %c0_i32_0 : i32, i32
  }
  func.func @transform_6(%arg0: i32) -> (i32, i32) {
    %c0_i32 = arith.constant 0 : i32
    %c0_i32_0 = arith.constant 0 : i32
    %c0_i32_1 = arith.constant 0 : i32
    return %c0_i32, %c0_i32_0 : i32, i32
  }
  func.func @transform_7(%arg0: i32) -> (i32, i32) {
    %c0_i32 = arith.constant 0 : i32
    %c0_i32_0 = arith.constant 0 : i32
    %c0_i32_1 = arith.constant 0 : i32
    return %c0_i32, %c0_i32_0 : i32, i32
  }
  func.func @transform_8(%arg0: i32) -> (i32, i32) {
    %c0_i32 = arith.constant 0 : i32
    %c0_i32_0 = arith.constant 0 : i32
    %c0_i32_1 = arith.constant 0 : i32
    return %c0_i32, %c0_i32_0 : i32, i32
  }
  func.func @transform_9(%arg0: i32) -> (i32, i32) {
    %c0_i32 = arith.constant 0 : i32
    %c0_i32_0 = arith.constant 0 : i32
    %c0_i32_1 = arith.constant 0 : i32
    return %c0_i32, %c0_i32_0 : i32, i32
  }
  func.func @transform_10(%arg0: i32) -> (i32, i32, i32) {
    %c0_i32 = arith.constant 0 : i32
    %c0_i32_0 = arith.constant 0 : i32
    %c0_i32_1 = arith.constant 0 : i32
    return %arg0, %c0_i32, %c0_i32_0 : i32, i32, i32
  }
}

</mosaic_0001>

<bundles_post_ra>
// kernel: tpu_custom_call.1
= control target key start
LH: loop header
LB: loop body
LE: loop exit
PB: predicated region body
PF: predicated region fallthrough
CT: control target
= control target key end

     0   :  { %vm41_vm0 = vcmask 261120   ;;  %s3087_s0 = inlined_call_operand.vmem [shape: f32[2,8,32], index: 0, kind: input, shape index: {}]   ;;  %s3088_s1 = inlined_call_operand.vmem [shape: f32[2,6,32], index: 1, kind: input, shape index: {}]   ;;  %s3089_s2 = inlined_call_operand.vmem [shape: bf16[32,96], index: 2, kind: input, shape index: {}]   ;;  %s3090_s3 = inlined_call_operand.vmem [shape: f32[1,96], index: 3, kind: input, shape index: {}]   ;;  %s3091_s4 = inlined_call_operand.vmem [shape: bf16[32,32], index: 4, kind: input, shape index: {}]   ;;  %s3092_s5 = inlined_call_operand.vmem [shape: f32[1,32], index: 5, kind: input, shape index: {}]   ;;  %s3093_s6 = inlined_call_operand.vmem [shape: bf16[32,64], index: 6, kind: input, shape index: {}]   ;;  %s3094_s7 = inlined_call_operand.vmem [shape: f32[1,64], index: 7, kind: input, shape index: {}]   ;;  %s3095_s8 = inlined_call_operand.vmem [shape: bf16[64,32], index: 8, kind: input, shape index: {}]   ;;  %s3096_s9 = inlined_call_operand.vmem [shape: f32[1,32], index: 9, kind: input, shape index: {}]   ;;  %s3097_s10 = inlined_call_operand.hbm [shape: f32[2,8,32], index: 10, kind: output, shape index: {}]  }
   0x1   :  { %v37_v0 = vld [vmem:[%s3087_s0] sm:$0xff]  ;;  %v38_v1 = vld [vmem:[%s3087_s0 + $0x8] sm:$0xff] }
   0x2   :  { %v42_v2 = vsel %vm41_vm0, %v37_v0, 0.0  ;;  %v45_v3 = vsel %vm41_vm0, %v38_v1, 0.0 }
   0x3   :  { %43 = vadd.xlane.f32.xlu0 %v42_v2 }
   0x7   :  { %46 = vadd.xlane.f32.xlu0 %v45_v3 }
   0x8   :  { %15 = vsyncpa [#allocation3], 0  ;;  %v2530_v14 = vld [vmem:[%s3089_s2] sm:$0xff]   ;;  %v2606_v15 = vmov 0.0   ;;  %v2531_v16 = vld [vmem:[%s3089_s2 + $0x8] sm:$0xff]   ;;  %vm2607_vm1 = vmmov 0   ;;  %v69_v21 = vlaneseq }
   0x9   :  { %2377 = vmatprep.subr.bf16.mxu0 %v2606_v15  ;;  %2385 = vmatprep.subr.bf16.mxu1 %v2606_v15  ;;  %v39_v26 = vld [vmem:[%s3088_s1] sm:$0x3f]  ;;  %v40_v28 = vld [vmem:[%s3088_s1 + $0x8] sm:$0x3f]  ;;  %s2608_s25 = smov 112   ;;  %s2609_s26 = smov 120  }
   0xa   :  { %2378 = vmatpush3.bf16.msra.mxu0 %v2530_v14  ;;  %2381 = vmatprep.mubr.msk.bf16.mxu0 %vm2607_vm1, %v2606_v15  ;;  %v2706_v24 = vshrl.u32 %v69_v21, 7  ;;  %v2281_v42 = vld [vmem:[%s3090_s3] ss:$0 sm:$0xff]  ;;  %s2610_s27 = smov 104   ;;  %s2611_s28 = smov 88   ;;  %vm811_vm2 = vcmask 64512  }
   0xb   :  { %2379 = vmatprep.subr.bf16.mxu0 %v2606_v15  ;;  %2387 = vmatprep.mubr.msk.bf16.mxu1 %vm2607_vm1, %v2606_v15  ;;  %s2612_s3 = smov 96   ;;  %s2613_s29 = smov 72   ;;  %v2615_v52 = vmov 1983009808   ;;  %v2616_v57 = vmov 1934713408  }
   0xc   :  { %v71_v25 = vsub.s32 0, %v2706_v24  ;;  %v81_v31 = vsub.s32 1, %v2706_v24  ;;  %s2614_s30 = smov 80   ;;  %v238_v53 = vunpack.c.l.s4 %v2615_v52  ;;  %v300_v58 = vunpack.c.l.s4 %v2616_v57  ;;  %s2618_s11 = smov 64  }
   0xd   :  { %s2619_s12 = smov 48   ;;  %s2620_s13 = smov 40   ;;  %vm1279_vm3 = vcmask 1043456   ;;  %vm1966_vm4 = vcmask 130048   ;;  %vm1969_vm5 = vcmask 195584   ;;  %vm2206_vm6 = vcmask 523264  }
   0xe   :  { %2380 = vmatpush3.bf16.msra.mxu0 %v2531_v16  ;;  %v72_v30 = vrot.slane %v39_v26, %v71_v25  ;;  %v76_v32 = vrot.slane %v40_v28, %v71_v25  ;;  %v82_v36 = vrot.slane %v39_v26, %v81_v31  ;;  %v86_v37 = vrot.slane %v40_v28, %v81_v31  ;;  %s2621_s14 = smov 56   ;;  %s2623_s18 = smov 8  }
   0xf   :  { %2391 = vmatprep.subr.bf16.mxu0 %v2606_v15  ;;  %v239_v56 = vunpack.c.0.s8 %v238_v53  ;;  %v301_v2 = vunpack.c.0.s8 %v300_v58  ;;  %s2624_s19 = smov 24  }
  0x90   :  { %v44_v4 = vpop.xlane.xlu0 %43 }
  0x91   :  { %v49_v5 = vmul.f32 0.03125, %v44_v4 }
  0x93   :  { %v51_v6 = vsub.f32 %v37_v0, %v49_v5 }
  0x94   :  { %v47_v7 = vpop.xlane.xlu0 %46 }
  0x95   :  { %v50_v8 = vmul.f32 0.03125, %v47_v7  ;;  %v53_v9 = vmul.f32 %v51_v6, %v51_v6 }
  0x97   :  { %v52_v10 = vsub.f32 %v38_v1, %v50_v8  ;;  %v55_v11 = vsel %vm41_vm0, %v53_v9, 0.0  ;;  %v2738_v1 = vsub.s32 %v239_v56, %v2706_v24 }
  0x98   :  { %56 = vadd.xlane.f32.xlu1 %v55_v11 }
  0x99   :  { %v54_v12 = vmul.f32 %v52_v10, %v52_v10 }
  0x9b   :  { %v58_v13 = vsel %vm41_vm0, %v54_v12, 0.0 }
  0x9c   :  { %59 = vadd.xlane.f32.xlu1 %v58_v13 }
 0x125   :  { %v57_v17 = vpop.xlane.xlu1 %56 }
 0x126   :  { %v61_v18 = vmul.f32 0.03125, %v57_v17 }
 0x128   :  { %v63_v19 = vadd.f32 1e-05, %v61_v18 }
 0x129   :  { %v60_v20 = vpop.xlane.xlu1 %59 }
 0x12a   :  { %2540 = vrsqrt.f32 %v63_v19  ;;  %v62_v22 = vmul.f32 0.03125, %v60_v20  ;;  %v2743_v20 = vsub.s32 %v301_v2, %v2706_v24 }
 0x12c   :  { %v64_v23 = vadd.f32 1e-05, %v62_v22 }
 0x12e   :  { %2542 = vrsqrt.f32 %v64_v23 }
 0x134   :  { %v2541_v27 = vpop.eup %2540 }
 0x135   :  { %v67_v29 = vmul.f32 %v2541_v27, %v51_v6 }
 0x137   :  { %v77_v35 = vmul.f32 %v72_v30, %v67_v29 }
 0x138   :  { %v2543_v33 = vpop.eup %2542 }
 0x139   :  { %v68_v34 = vmul.f32 %v2543_v33, %v52_v10  ;;  %v2716_v39 = vadd.f32 %v82_v36, %v77_v35 }
 0x13b   :  { %v78_v38 = vmul.f32 %v76_v32, %v68_v34 }
 0x13d   :  { %v2718_v40 = vadd.f32 %v86_v37, %v78_v38 }
 0x13f   :  { %v89_v41 = vpack.c.bf16 %v2718_v40, %v2716_v39 }
 0x141   :  { %2382 = vmatmul.mubr.msk.bf16.vlgmr.msra.gmra.mrb[0].mxu0 %vm41_vm0, %v89_v41 }
 0x142   :  { %2393 = vmatprep.mubr.msk.bf16.mxu0 %vm2607_vm1, %v2606_v15 }
 0x214   :  { %v150_v43 = vpop.f32.mrb[0].mxu0 }
 0x215   :  { %v2383_v44 = vpop.f32.mrb[1].mxu0  ;;  %v151_v46 = vadd.f32 %v2281_v42, %v150_v43 }
 0x216   :  { %v153_v45 = vpop.f32.mrb[2].mxu0 }
 0x217   :  { %v154_v47 = vadd.f32 %v2281_v42, %v153_v45  ;;  %v2384_v48 = vpop.f32.mrb[3].mxu0 }
 0x219   :  { %v2728_v49 = vpack.c.bf16 %v154_v47, %v151_v46 }
 0x21b   :  { %161 = vrot.lane.b32.xlu1 %v2728_v49, %s2608_s25  ;;  %159 = vrot.lane.b32.xlu0 %v2728_v49, %s2609_s26  ;;  %v185_v7 = vshrl.u32 %v2728_v49, 16 }
 0x21f   :  { %163 = vrot.lane.b32.xlu1 %v2728_v49, %s2610_s27  ;;  %167 = vrot.lane.b32.xlu0 %v2728_v49, %s2611_s28 }
 0x223   :  { %165 = vrot.lane.b32.xlu1 %v2728_v49, %s2612_s3  ;;  %171 = vrot.lane.b32.xlu0 %v2728_v49, %s2613_s29 }
 0x227   :  { %169 = vrot.lane.b32.xlu1 %v2728_v49, %s2614_s30 }
 0x28d   :  { %v162_v50 = vpop.permute.xlu1 %161  ;;  %v160_v51 = vpop.permute.xlu0 %159 }
 0x28e   :  { %v186_v62 = vshrl.u32 %v160_v51, 16  ;;  %v183_v3 = vpack.i.b16 %v160_v51, %v2728_v49  ;;  %v193_v6 = vshrl.u32 %v162_v50, 16 }
 0x290   :  { %v187_v14 = vpack.i.b16 %v186_v62, %v185_v7 }
 0x291   :  { %v164_v54 = vpop.permute.xlu1 %163  ;;  %v168_v55 = vpop.permute.xlu0 %167 }
 0x292   :  { %v202_v63 = vshrl.u32 %v168_v55, 16  ;;  %v194_v4 = vshrl.u32 %v164_v54, 16  ;;  %v191_v8 = vpack.i.b16 %v164_v54, %v162_v50 }
 0x294   :  { %v195_v16 = vpack.i.b16 %v194_v4, %v193_v6 }
 0x295   :  { %v166_v59 = vpop.permute.xlu1 %165  ;;  %v172_v0 = vpop.permute.xlu0 %171 }
 0x296   :  { %v201_v60 = vshrl.u32 %v166_v59, 16  ;;  %v199_v61 = vpack.i.b16 %v168_v55, %v166_v59  ;;  %v210_v11 = vshrl.u32 %v172_v0, 16 }
 0x298   :  { %v203_v9 = vpack.i.b16 %v202_v63, %v201_v60  ;;  %v235_v10 = vcombine.low %v183_v3, %v199_v61  ;;  %v236_v21 = vcombine.high %v183_v3, %v199_v61 }
 0x299   :  { %v170_v5 = vpop.permute.xlu1 %169 }
 0x29a   :  { %v207_v12 = vpack.i.b16 %v172_v0, %v170_v5  ;;  %v209_v13 = vshrl.u32 %v170_v5, 16  ;;  %v369_v22 = vcombine.low %v187_v14, %v203_v9  ;;  %v370_v23 = vcombine.high %v187_v14, %v203_v9 }
 0x29b   :  { %v243_v25 = vrot.slane %v235_v10, %v2738_v1  ;;  %v250_v36 = vrot.slane %v236_v21, %v2738_v1  ;;  %v2617_v14 = vmov 0  }
 0x29c   :  { %v211_v17 = vpack.i.b16 %v210_v11, %v209_v13  ;;  %v251_v18 = vcombine.low %v191_v8, %v207_v12  ;;  %v252_v19 = vcombine.high %v191_v8, %v207_v12  ;;  %v377_v32 = vrot.slane %v369_v22, %v2738_v1 }
 0x29d   :  { %v384_v33 = vrot.slane %v370_v23, %v2738_v1 }
 0x29e   :  { %v259_v26 = vrot.slane %v251_v18, %v2738_v1  ;;  %v385_v27 = vcombine.low %v195_v16, %v211_v17  ;;  %v386_v28 = vcombine.high %v195_v16, %v211_v17  ;;  %v266_v29 = vrot.slane %v252_v19, %v2738_v1 }
 0x2a0   :  { %v297_v30 = vcombine.low %v243_v25, %v259_v26  ;;  %v298_v31 = vcombine.high %v243_v25, %v259_v26  ;;  %v393_v34 = vrot.slane %v385_v27, %v2738_v1  ;;  %v400_v35 = vrot.slane %v386_v28, %v2738_v1 }
 0x2a1   :  { %v313_v45 = vcombine.low %v250_v36, %v266_v29  ;;  %v314_v46 = vcombine.high %v250_v36, %v266_v29 }
 0x2a2   :  { %v305_v37 = vrot.slane %v297_v30, %v2743_v20  ;;  %v312_v38 = vrot.slane %v298_v31, %v2743_v20  ;;  %v431_v41 = vcombine.low %v377_v32, %v393_v34  ;;  %v432_v42 = vcombine.high %v377_v32, %v393_v34 }
 0x2a3   :  { %v447_v43 = vcombine.low %v384_v33, %v400_v35  ;;  %v448_v44 = vcombine.high %v384_v33, %v400_v35  ;;  %v321_v58 = vrot.slane %v313_v45, %v2743_v20  ;;  %v328_v59 = vrot.slane %v314_v46, %v2743_v20 }
 0x2a4   :  { %v2285_v47 = vcombine.low %v305_v37, %v312_v38  ;;  %v2287_v48 = vcombine.high %v305_v37, %v312_v38  ;;  %v439_v50 = vrot.slane %v431_v41, %v2743_v20  ;;  %v446_v51 = vrot.slane %v432_v42, %v2743_v20 }
 0x2a5   :  { %v455_v52 = vrot.slane %v447_v43, %v2743_v20  ;;  %v462_v53 = vrot.slane %v448_v44, %v2743_v20  ;;  %v2293_v4 = vcombine.low %v321_v58, %v328_v59  ;;  %v2295_v5 = vcombine.high %v321_v58, %v328_v59 }
 0x2a6   :  { %v511_v54 = vrot.slane %v2285_v47, %v2738_v1  ;;  %v527_v55 = vrot.slane %v2287_v48, %v2738_v1  ;;  %v2289_v56 = vcombine.low %v439_v50, %v446_v51  ;;  %v2291_v57 = vcombine.high %v439_v50, %v446_v51 }
 0x2a7   :  { %v2297_v63 = vcombine.low %v455_v52, %v462_v53  ;;  %v2299_v0 = vcombine.high %v455_v52, %v462_v53  ;;  %v629_v17 = vrot.slane %v2293_v4, %v2738_v1  ;;  %v645_v18 = vrot.slane %v2295_v5, %v2738_v1 }
 0x2a8   :  { %v536_v60 = vcombine.high %v511_v54, %v527_v55  ;;  %v570_v61 = vrot.slane %v2289_v56, %v2738_v1  ;;  %v586_v62 = vrot.slane %v2291_v57, %v2738_v1  ;;  %v535_v8 = vcombine.low %v511_v54, %v527_v55 }
 0x2a9   :  { %v688_v9 = vrot.slane %v2297_v63, %v2738_v1  ;;  %v704_v10 = vrot.slane %v2299_v0, %v2738_v1  ;;  %v654_v32 = vcombine.high %v629_v17, %v645_v18  ;;  %v653_v51 = vcombine.low %v629_v17, %v645_v18 }
 0x2aa   :  { %v550_v2 = vrot.slane %v536_v60, %v2743_v20  ;;  %v595_v3 = vcombine.high %v570_v61, %v586_v62  ;;  %v594_v6 = vcombine.low %v570_v61, %v586_v62  ;;  %v543_v26 = vrot.slane %v535_v8, %v2743_v20 }
 0x2ab   :  { %v713_v28 = vcombine.high %v688_v9, %v704_v10  ;;  %v668_v42 = vrot.slane %v654_v32, %v2743_v20  ;;  %v712_v46 = vcombine.low %v688_v9, %v704_v10  ;;  %v661_v61 = vrot.slane %v653_v51, %v2743_v20 }
 0x2ac   :  { %v609_v7 = vrot.slane %v595_v3, %v2743_v20  ;;  %v754_v12 = vshrl.u32 %v550_v2, 16  ;;  %v602_v22 = vrot.slane %v594_v6, %v2743_v20  ;;  %v560_v23 = vcombine.high %v550_v2, %v2617_v14 }
 0x2ad   :  { %v742_v34 = vshrl.u32 %v543_v26, 16  ;;  %v727_v36 = vrot.slane %v713_v28, %v2743_v20  ;;  %v559_v44 = vcombine.high %v543_v26, %v2617_v14  ;;  %v790_v50 = vshrl.u32 %v668_v42, 16 }
 0x2ae   :  { %v753_v11 = vpack.i.b16 %v609_v7, %v550_v2  ;;  %v755_v13 = vshrl.u32 %v609_v7, 16  ;;  %v619_v16 = vcombine.high %v609_v7, %v2617_v14  ;;  %v743_v30 = vshrl.u32 %v602_v22, 16 }
 0x2af   :  { %v760_v31 = vshrl.u32 %v560_v23, 16  ;;  %v741_v33 = vpack.i.b16 %v602_v22, %v543_v26  ;;  %v618_v41 = vcombine.high %v602_v22, %v2617_v14  ;;  %v791_v45 = vshrl.u32 %v727_v36, 16 }
 0x2b0   :  { %v816_v19 = vsel %vm811_vm2, %v753_v11, 0  ;;  %v756_v21 = vpack.i.b16 %v755_v13, %v754_v12  ;;  %v761_v27 = vshrl.u32 %v619_v16, 16  ;;  %v759_v29 = vpack.i.b16 %v619_v16, %v560_v23 }
 0x2b1   :  { %2386 = vmatpush3.bf16.xpose.msra.mxu1 %v816_v19  ;;  %v744_v38 = vpack.i.b16 %v743_v30, %v742_v34  ;;  %v789_v47 = vpack.i.b16 %v727_v36, %v668_v42  ;;  %v749_v48 = vshrl.u32 %v618_v41, 16  ;;  %v747_v52 = vpack.i.b16 %v618_v41, %v559_v44 }
 0x2b2   :  { %v862_v25 = vsel %vm811_vm2, %v756_v21, 0  ;;  %2397 = vmatprep.subr.bf16.mxu1 %v2606_v15  ;;  %v762_v35 = vpack.i.b16 %v761_v27, %v760_v31  ;;  %v908_v37 = vsel %vm811_vm2, %v759_v29, 0  ;;  %v748_v53 = vshrl.u32 %v559_v44, 16 }
 0x2b3   :  { %2392 = vmatpush3.bf16.xpose.msra.mxu0 %v862_v25  ;;  %v792_v54 = vpack.i.b16 %v791_v45, %v790_v50  ;;  %v737_v55 = vcombine.high %v727_v36, %v2617_v14  ;;  %v1000_v56 = vsel %vm811_vm2, %v789_v47, 0  ;;  %v720_v58 = vrot.slane %v712_v46, %v2743_v20 }
 0x2b4   :  { %2403 = vmatprep.subr.bf16.mxu0 %v2606_v15  ;;  %v954_v43 = vsel %vm811_vm2, %v762_v35, 0  ;;  %v750_v57 = vpack.i.b16 %v749_v48, %v748_v53  ;;  %v678_v59 = vcombine.high %v668_v42, %v2617_v14  ;;  %v778_v4 = vshrl.u32 %v661_v61, 16 }
 0x2b5   :  { %v1046_v60 = vsel %vm811_vm2, %v792_v54, 0  ;;  %v797_v62 = vshrl.u32 %v737_v55, 16  ;;  %v779_v0 = vshrl.u32 %v720_v58, 16  ;;  %v777_v3 = vpack.i.b16 %v720_v58, %v661_v61 }
 0x2b6   :  { %v795_v63 = vpack.i.b16 %v737_v55, %v678_v59  ;;  %v796_v2 = vshrl.u32 %v678_v59, 16  ;;  %v736_v8 = vcombine.high %v720_v58, %v2617_v14  ;;  %v677_v10 = vcombine.high %v661_v61, %v2617_v14 }
 0x2b7   :  { %v780_v7 = vpack.i.b16 %v779_v0, %v778_v4 }
 0x2b8   :  { %2388 = vmatmul.mubr.msk.bf16.vlgmr.msra.gmra.mrb[0].mxu1 %vm811_vm2, %v741_v33  ;;  %v798_v5 = vpack.i.b16 %v797_v62, %v796_v2  ;;  %v1092_v6 = vsel %vm811_vm2, %v795_v63, 0  ;;  %v785_v11 = vshrl.u32 %v736_v8, 16  ;;  %v783_v12 = vpack.i.b16 %v736_v8, %v677_v10 }
 0x2b9   :  { %2398 = vmatpush3.bf16.xpose.msra.mxu1 %v908_v37  ;;  %2399 = vmatprep.mubr.msk.bf16.mxu1 %vm2607_vm1, %v2606_v15  ;;  %v784_v13 = vshrl.u32 %v677_v10, 16 }
 0x2ba   :  { %2394 = vmatmul.mubr.msk.bf16.vlgmr.msra.gmra.mrb[4].mxu0 %vm811_vm2, %v744_v38  ;;  %2409 = vmatprep.subr.bf16.mxu1 %v2606_v15  ;;  %v1138_v9 = vsel %vm811_vm2, %v798_v5, 0 }
 0x2bb   :  { %2404 = vmatpush3.bf16.xpose.msra.mxu0 %v954_v43  ;;  %2405 = vmatprep.mubr.msk.bf16.mxu0 %vm2607_vm1, %v2606_v15  ;;  %v786_v16 = vpack.i.b16 %v785_v11, %v784_v13 }
 0x2bc   :  { %2415 = vmatprep.subr.bf16.mxu0 %v2606_v15 }
 0x2c0   :  { %2400 = vmatmul.mubr.msk.bf16.vlgmr.msra.gmra.mrb[4].mxu1 %vm811_vm2, %v747_v52 }
 0x2c1   :  { %2410 = vmatpush3.bf16.xpose.msra.mxu1 %v1000_v56  ;;  %2411 = vmatprep.mubr.msk.bf16.mxu1 %vm2607_vm1, %v2606_v15 }
 0x2c2   :  { %2406 = vmatmul.mubr.msk.bf16.vlgmr.msra.gmra.mrb[8].mxu0 %vm811_vm2, %v750_v57  ;;  %2421 = vmatprep.subr.bf16.mxu1 %v2606_v15 }
 0x2c3   :  { %2416 = vmatpush3.bf16.xpose.msra.mxu0 %v1046_v60  ;;  %2417 = vmatprep.mubr.msk.bf16.mxu0 %vm2607_vm1, %v2606_v15 }
 0x2c4   :  { %2427 = vmatprep.subr.bf16.mxu0 %v2606_v15 }
 0x2c8   :  { %2412 = vmatmul.mubr.msk.bf16.vlgmr.msra.gmra.mrb[8].mxu1 %vm811_vm2, %v777_v3 }
 0x2c9   :  { %2422 = vmatpush3.bf16.xpose.msra.mxu1 %v1092_v6  ;;  %2423 = vmatprep.mubr.msk.bf16.mxu1 %vm2607_vm1, %v2606_v15 }
 0x2ca   :  { %2418 = vmatmul.mubr.msk.bf16.vlgmr.msra.gmra.mrb[12].mxu0 %vm811_vm2, %v780_v7  ;;  %2433 = vmatprep.subr.bf16.mxu1 %v2606_v15 }
 0x2cb   :  { %2428 = vmatpush3.bf16.xpose.msra.mxu0 %v1138_v9  ;;  %2429 = vmatprep.mubr.msk.bf16.mxu0 %vm2607_vm1, %v2606_v15 }
 0x2cc   :  { %2439 = vmatprep.subr.bf16.mxu0 %v2606_v15 }
 0x2d0   :  { %2424 = vmatmul.mubr.msk.bf16.vlgmr.msra.gmra.mrb[12].mxu1 %vm811_vm2, %v783_v12 }
 0x2d1   :  { %2435 = vmatprep.mubr.msk.bf16.mxu1 %vm2607_vm1, %v2606_v15 }
 0x2d2   :  { %2430 = vmatmul.mubr.msk.bf16.vlgmr.msra.gmra.mrb[16].mxu0 %vm811_vm2, %v786_v16 }
 0x2d3   :  { %2441 = vmatprep.mubr.msk.bf16.mxu0 %vm2607_vm1, %v2606_v15 }
 0x38b   :  { %v852_v17 = vpop.f32.mrb[0].mxu1 }
 0x38c   :  { %v2389_v18 = vpop.f32.mrb[1].mxu1  ;;  %v1180_v19 = vsel %vm811_vm2, %v852_v17, -inf }
 0x38d   :  { %1181 = vmax.xlane.f32.xlu1 %v1180_v19  ;;  %v855_v21 = vpop.f32.mrb[2].mxu1  ;;  %v898_v22 = vpop.f32.mrb[4].mxu0 }
 0x38e   :  { %v2390_v23 = vpop.f32.mrb[3].mxu1  ;;  %v2395_v25 = vpop.f32.mrb[5].mxu0  ;;  %v1183_v26 = vsel %vm811_vm2, %v898_v22, -inf }
 0x38f   :  { %1184 = vmax.xlane.f32.xlu0 %v1183_v26  ;;  %v901_v27 = vpop.f32.mrb[6].mxu0 }
 0x390   :  { %v2396_v28 = vpop.f32.mrb[7].mxu0 }
 0x393   :  { %v2827_v29 = vpop.f32.mrb[4].mxu1 }
 0x394   :  { %v2401_v30 = vpop.f32.mrb[5].mxu1  ;;  %v1186_v31 = vsel %vm811_vm2, %v2827_v29, -inf }
 0x395   :  { %v947_v32 = vpop.f32.mrb[6].mxu1  ;;  %1187 = vmax.xlane.f32.xlu0 %v1186_v31  ;;  %v990_v33 = vpop.f32.mrb[8].mxu0 }
 0x396   :  { %v2402_v34 = vpop.f32.mrb[7].mxu1  ;;  %v2407_v35 = vpop.f32.mrb[9].mxu0  ;;  %v1189_v38 = vsel %vm811_vm2, %v990_v33, -inf }
 0x397   :  { %v993_v36 = vpop.f32.mrb[10].mxu0 }
 0x398   :  { %v2408_v37 = vpop.f32.mrb[11].mxu0 }
 0x399   :  { %1190 = vmax.xlane.f32.xlu0 %v1189_v38 }
 0x39b   :  { %v1036_v41 = vpop.f32.mrb[8].mxu1 }
 0x39c   :  { %v2413_v42 = vpop.f32.mrb[9].mxu1  ;;  %v1192_v43 = vsel %vm811_vm2, %v1036_v41, -inf }
 0x39d   :  { %1193 = vmax.xlane.f32.xlu1 %v1192_v43  ;;  %v1039_v44 = vpop.f32.mrb[10].mxu1  ;;  %v1082_v45 = vpop.f32.mrb[12].mxu0 }
 0x39e   :  { %v2414_v46 = vpop.f32.mrb[11].mxu1  ;;  %v2419_v47 = vpop.f32.mrb[13].mxu0  ;;  %v1195_v48 = vsel %vm811_vm2, %v1082_v45, -inf }
 0x39f   :  { %1196 = vmax.xlane.f32.xlu0 %v1195_v48  ;;  %v1085_v50 = vpop.f32.mrb[14].mxu0 }
 0x3a0   :  { %v2420_v51 = vpop.f32.mrb[15].mxu0 }
 0x3a3   :  { %v1128_v52 = vpop.f32.mrb[12].mxu1 }
 0x3a4   :  { %v2425_v53 = vpop.f32.mrb[13].mxu1  ;;  %v1198_v54 = vsel %vm811_vm2, %v1128_v52, -inf }
 0x3a5   :  { %1199 = vmax.xlane.f32.xlu1 %v1198_v54  ;;  %v1131_v55 = vpop.f32.mrb[14].mxu1  ;;  %v1174_v56 = vpop.f32.mrb[16].mxu0 }
 0x3a6   :  { %v2426_v57 = vpop.f32.mrb[15].mxu1  ;;  %v2431_v58 = vpop.f32.mrb[17].mxu0  ;;  %v1201_v59 = vsel %vm811_vm2, %v1174_v56, -inf }
 0x3a7   :  { %1202 = vmax.xlane.f32.xlu0 %v1201_v59  ;;  %v1177_v60 = vpop.f32.mrb[18].mxu0 }
 0x3a8   :  { %v2432_v61 = vpop.f32.mrb[19].mxu0 }
 0x3b6   :  { %173 = vrot.lane.b32.xlu1 %v2728_v49, %s2618_s11 }
 0x41a   :  { %v1182_v62 = vpop.xlane.xlu1 %1181 }
 0x41b   :  { %v1204_v63 = vsub.f32 %v852_v17, %v1182_v62 }
 0x41c   :  { %v1185_v0 = vpop.xlane.xlu0 %1184 }
 0x41d   :  { %v1212_v2 = vmul.f32 1.442695, %v1204_v63  ;;  %v1205_v3 = vsub.f32 %v898_v22, %v1185_v0 }
 0x41f   :  { %2544 = vpow2.f32 %v1212_v2  ;;  %v1214_v4 = vmul.f32 1.442695, %v1205_v3 }
 0x421   :  { %2546 = vpow2.f32 %v1214_v4 }
 0x422   :  { %v1188_v9 = vpop.xlane.xlu0 %1187 }
 0x423   :  { %v1206_v13 = vsub.f32 %v2827_v29, %v1188_v9 }
 0x425   :  { %v1216_v21 = vmul.f32 1.442695, %v1206_v13 }
 0x426   :  { %v1191_v10 = vpop.xlane.xlu0 %1190 }
 0x427   :  { %v1207_v12 = vsub.f32 %v990_v33, %v1191_v10 }
 0x429   :  { %v2837_v5 = vpop.eup %2544  ;;  %v1218_v17 = vmul.f32 1.442695, %v1207_v12 }
 0x42a   :  { %v1228_v6 = vsel %vm811_vm2, %v2837_v5, 0.0  ;;  %v1194_v11 = vpop.xlane.xlu1 %1193 }
 0x42b   :  { %v2841_v7 = vpop.eup %2546  ;;  %1229 = vadd.xlane.f32.xlu1 %v1228_v6  ;;  %v1208_v18 = vsub.f32 %v1036_v41, %v1194_v11  ;;  %2548 = vpow2.f32 %v1218_v17 }
 0x42c   :  { %v1231_v8 = vsel %vm811_vm2, %v2841_v7, 0.0  ;;  %v1197_v19 = vpop.xlane.xlu0 %1196  ;;  %2550 = vpow2.f32 %v1216_v21 }
 0x42d   :  { %1232 = vadd.xlane.f32.xlu0 %v1231_v8  ;;  %v1220_v23 = vmul.f32 1.442695, %v1208_v18  ;;  %v1209_v25 = vsub.f32 %v1082_v45, %v1197_v19 }
 0x42f   :  { %2552 = vpow2.f32 %v1220_v23  ;;  %v1222_v28 = vmul.f32 1.442695, %v1209_v25 }
 0x432   :  { %v1200_v16 = vpop.xlane.xlu1 %1199 }
 0x433   :  { %v1210_v22 = vsub.f32 %v1128_v52, %v1200_v16 }
 0x434   :  { %v1203_v26 = vpop.xlane.xlu0 %1202 }
 0x435   :  { %v1224_v27 = vmul.f32 1.442695, %v1210_v22  ;;  %v2849_v31 = vpop.eup %2548 }
 0x436   :  { %v2851_v29 = vpop.eup %2550  ;;  %v1237_v32 = vsel %vm811_vm2, %v2849_v31, 0.0  ;;  %v174_v44 = vpop.permute.xlu1 %173 }
 0x437   :  { %2554 = vpow2.f32 %v1224_v27  ;;  %v1234_v34 = vsel %vm811_vm2, %v2851_v29, 0.0  ;;  %v217_v53 = vshrl.u32 %v174_v44, 16 }
 0x438   :  { %2556 = vpow2.f32 %v1222_v28 }
 0x439   :  { %v2855_v33 = vpop.eup %2552 }
 0x43a   :  { %v1240_v36 = vsel %vm811_vm2, %v2855_v33, 0.0 }
 0x43c   :  { %177 = vrot.lane.b32.xlu1 %v2728_v49, %s2619_s12 }
 0x440   :  { %179 = vrot.lane.b32.xlu1 %v2728_v49, %s2620_s13 }
 0x441   :  { %v2859_v35 = vpop.eup %2554 }
 0x442   :  { %v2863_v37 = vpop.eup %2556  ;;  %v1246_v38 = vsel %vm811_vm2, %v2859_v35, 0.0 }
 0x443   :  { %175 = vrot.lane.b32.xlu0 %v2728_v49, %s2621_s14  ;;  %v1211_v49 = vsub.f32 %v1174_v56, %v1203_v26  ;;  %v1243_v41 = vsel %vm811_vm2, %v2863_v37, 0.0 }
 0x445   :  { %v1226_v30 = vmul.f32 1.442695, %v1211_v49 }
 0x447   :  { %2558 = vpow2.f32 %v1226_v30  ;;  %v230_v30 = vpack.i.b16 %v2617_v14, %v2617_v14 }
 0x451   :  { %v2869_v42 = vpop.eup %2558 }
 0x452   :  { %v1249_v43 = vsel %vm811_vm2, %v2869_v42, 0.0 }
 0x462   :  { %1238 = vadd.xlane.f32.xlu0 %v1237_v32 }
 0x464   :  { %1235 = vadd.xlane.f32.xlu1 %v1234_v34 }
 0x466   :  { %1241 = vadd.xlane.f32.xlu0 %v1240_v36 }
 0x468   :  { %1247 = vadd.xlane.f32.xlu1 %v1246_v38 }
 0x46a   :  { %1244 = vadd.xlane.f32.xlu0 %v1243_v41 }
 0x46e   :  { %1250 = vadd.xlane.f32.xlu0 %v1249_v43 }
 0x4b8   :  { %v1230_v45 = vpop.xlane.xlu1 %1229 }
 0x4b9   :  { %2560 = vrcp.f32 %v1230_v45 }
 0x4ba   :  { %v1233_v46 = vpop.xlane.xlu0 %1232 }
 0x4bb   :  { %2562 = vrcp.f32 %v1233_v46 }
 0x4bc   :  { %v178_v47 = vpop.permute.xlu1 %177 }
 0x4bd   :  { %v225_v55 = vshrl.u32 %v178_v47, 16 }
 0x4be   :  { %v176_v48 = vpop.permute.xlu0 %175 }
 0x4bf   :  { %v218_v50 = vshrl.u32 %v176_v48, 16  ;;  %v2873_v51 = vpack.i.b16 %v176_v48, %v174_v44 }
 0x4c0   :  { %v180_v52 = vpop.permute.xlu1 %179 }
 0x4c1   :  { %v2875_v54 = vpack.i.b16 %v180_v52, %v178_v47  ;;  %v226_v56 = vshrl.u32 %v180_v52, 16  ;;  %v219_v57 = vpack.i.b16 %v218_v50, %v217_v53  ;;  %v274_v58 = vrot.slane %v2873_v51, %v2738_v1 }
 0x4c3   :  { %v227_v59 = vpack.i.b16 %v226_v56, %v225_v55  ;;  %v289_v60 = vrot.slane %v2875_v54, %v2738_v1  ;;  %v408_v63 = vrot.slane %v219_v57, %v2738_v1  ;;  %v2561_v23 = vpop.eup %2560  ;;  %v401_v50 = vcombine.high %v219_v57, %v230_v30 }
 0x4c4   :  { %v1260_v49 = vmul.f32 %v2561_v23, %v2837_v5  ;;  %v282_v5 = vcombine.high %v2875_v54, %v230_v30 }
 0x4c5   :  { %v329_v61 = vcombine.low %v274_v58, %v289_v60  ;;  %v330_v62 = vcombine.high %v274_v58, %v289_v60  ;;  %v423_v0 = vrot.slane %v227_v59, %v2738_v1  ;;  %v2563_v27 = vpop.eup %2562  ;;  %v416_v43 = vcombine.high %v227_v59, %v230_v30 }
 0x4c6   :  { %v1261_v41 = vmul.f32 %v2563_v27, %v2841_v7  ;;  %v1268_v53 = vpack.c.bf16 %v1260_v49, %v1260_v49  ;;  %v267_v7 = vcombine.high %v2873_v51, %v230_v30  ;;  %v415_v54 = vrot.slane %v401_v50, %v2738_v1 }
 0x4c7   :  { %v337_v2 = vrot.slane %v329_v61, %v2743_v20  ;;  %v344_v3 = vrot.slane %v330_v62, %v2743_v20  ;;  %v463_v4 = vcombine.low %v408_v63, %v423_v0  ;;  %v464_v6 = vcombine.high %v408_v63, %v423_v0 }
 0x4c8   :  { %v430_v56 = vrot.slane %v416_v43, %v2738_v1  ;;  %v1269_v59 = vpack.c.bf16 %v1261_v41, %v1261_v41  ;;  %v296_v57 = vrot.slane %v282_v5, %v2738_v1  ;;  %v281_v60 = vrot.slane %v267_v7, %v2738_v1 }
 0x4c9   :  { %v2286_v8 = vcombine.low %v337_v2, %v344_v3  ;;  %v2288_v9 = vcombine.high %v337_v2, %v344_v3  ;;  %v471_v10 = vrot.slane %v463_v4, %v2743_v20  ;;  %v478_v11 = vrot.slane %v464_v6, %v2743_v20 }
 0x4ca   :  { %v479_v61 = vcombine.low %v415_v54, %v430_v56  ;;  %v480_v62 = vcombine.high %v415_v54, %v430_v56  ;;  %v345_v63 = vcombine.low %v281_v60, %v296_v57  ;;  %v346_v0 = vcombine.high %v281_v60, %v296_v57 }
 0x4cb   :  { %v518_v12 = vrot.slane %v2286_v8, %v2738_v1  ;;  %v534_v13 = vrot.slane %v2288_v9, %v2738_v1  ;;  %v2290_v16 = vcombine.low %v471_v10, %v478_v11  ;;  %v2292_v17 = vcombine.high %v471_v10, %v478_v11 }
 0x4cc   :  { %v487_v2 = vrot.slane %v479_v61, %v2743_v20  ;;  %v494_v3 = vrot.slane %v480_v62, %v2743_v20  ;;  %v353_v4 = vrot.slane %v345_v63, %v2743_v20  ;;  %v360_v6 = vrot.slane %v346_v0, %v2743_v20 }
 0x4cd   :  { %v551_v18 = vcombine.low %v518_v12, %v534_v13  ;;  %v577_v19 = vrot.slane %v2290_v16, %v2738_v1  ;;  %v593_v21 = vrot.slane %v2292_v17, %v2738_v1 }
 0x4ce   :  { %v2298_v8 = vcombine.low %v487_v2, %v494_v3  ;;  %v2300_v9 = vcombine.high %v487_v2, %v494_v3  ;;  %v2294_v10 = vcombine.low %v353_v4, %v360_v6  ;;  %v2296_v11 = vcombine.high %v353_v4, %v360_v6 }
 0x4cf   :  { %v558_v22 = vrot.slane %v551_v18, %v2743_v20  ;;  %v610_v25 = vcombine.low %v577_v19, %v593_v21 }
 0x4d0   :  { %v695_v12 = vrot.slane %v2298_v8, %v2738_v1  ;;  %v711_v13 = vrot.slane %v2300_v9, %v2738_v1  ;;  %v636_v16 = vrot.slane %v2294_v10, %v2738_v1  ;;  %v652_v17 = vrot.slane %v2296_v11, %v2738_v1 }
 0x4d1   :  { %v561_v26 = vcombine.high %v558_v22, %v2617_v14  ;;  %v617_v28 = vrot.slane %v610_v25, %v2743_v20  ;;  %v766_v34 = vshrl.u32 %v558_v22, 16 }
 0x4d2   :  { %v728_v19 = vcombine.low %v695_v12, %v711_v13 }
 0x4d3   :  { %v765_v32 = vpack.i.b16 %v617_v28, %v558_v22  ;;  %v767_v36 = vshrl.u32 %v617_v28, 16  ;;  %v620_v38 = vcombine.high %v617_v28, %v2617_v14  ;;  %v772_v44 = vshrl.u32 %v561_v26, 16 }
 0x4d4   :  { %v669_v22 = vcombine.low %v636_v16, %v652_v17  ;;  %v735_v25 = vrot.slane %v728_v19, %v2743_v20 }
 0x4d5   :  { %v1281_v45 = vsel %vm1279_vm3, %v765_v32, 0  ;;  %v768_v46 = vpack.i.b16 %v767_v36, %v766_v34  ;;  %v771_v47 = vpack.i.b16 %v620_v38, %v561_v26  ;;  %v773_v48 = vshrl.u32 %v620_v38, 16 }
 0x4d6   :  { %2434 = vmatpush3.bf16.msra.mxu1 %v1281_v45  ;;  %v676_v26 = vrot.slane %v669_v22, %v2743_v20  ;;  %v803_v28 = vshrl.u32 %v735_v25, 16  ;;  %v738_v41 = vcombine.high %v735_v25, %v2617_v14 }
 0x4d7   :  { %v1327_v52 = vsel %vm1279_vm3, %v768_v46, 0  ;;  %2445 = vmatprep.subr.bf16.mxu1 %v2606_v15  ;;  %v774_v55 = vpack.i.b16 %v773_v48, %v772_v44  ;;  %v1373_v58 = vsel %vm1279_vm3, %v771_v47, 0 }
 0x4d8   :  { %2440 = vmatpush3.bf16.msra.mxu0 %v1327_v52  ;;  %v802_v49 = vshrl.u32 %v676_v26, 16  ;;  %v801_v46 = vpack.i.b16 %v735_v25, %v676_v26  ;;  %v679_v47 = vcombine.high %v676_v26, %v2617_v14 }
 0x4d9   :  { %2436 = vmatmul.mubr.msk.bf16.vlgmr.msra.gmra.mrb[16].mxu1 %vm811_vm2, %v1268_v53  ;;  %2451 = vmatprep.subr.bf16.mxu0 %v2606_v15  ;;  %v1419_v51 = vsel %vm1279_vm3, %v774_v55, 0 }
 0x4da   :  { %2446 = vmatpush3.bf16.msra.mxu1 %v1373_v58  ;;  %2447 = vmatprep.mubr.msk.bf16.mxu1 %vm2607_vm1, %v2606_v15  ;;  %v804_v38 = vpack.i.b16 %v803_v28, %v802_v49  ;;  %v808_v52 = vshrl.u32 %v679_v47, 16 }
 0x4db   :  { %2442 = vmatmul.mubr.msk.bf16.vlgmr.msra.gmra.mrb[20].mxu0 %vm811_vm2, %v1269_v59  ;;  %2457 = vmatprep.subr.bf16.mxu1 %v2606_v15  ;;  %v807_v59 = vpack.i.b16 %v738_v41, %v679_v47 }
 0x4dc   :  { %2452 = vmatpush3.bf16.msra.mxu0 %v1419_v51  ;;  %2453 = vmatprep.mubr.msk.bf16.mxu0 %vm2607_vm1, %v2606_v15  ;;  %v1511_v48 = vsel %vm1279_vm3, %v804_v38, 0 }
 0x4dd   :  { %2463 = vmatprep.subr.bf16.mxu0 %v2606_v15 }
 0x4ef   :  { %v1239_v18 = vpop.xlane.xlu0 %1238 }
 0x4f0   :  { %2564 = vrcp.f32 %v1239_v18 }
 0x4f1   :  { %v1236_v21 = vpop.xlane.xlu1 %1235 }
 0x4f2   :  { %2566 = vrcp.f32 %v1236_v21 }
 0x4f3   :  { %v1242_v23 = vpop.xlane.xlu0 %1241 }
 0x4f4   :  { %2568 = vrcp.f32 %v1242_v23 }
 0x4f5   :  { %v1248_v34 = vpop.xlane.xlu1 %1247 }
 0x4f7   :  { %v1245_v27 = vpop.xlane.xlu0 %1244 }
 0x4f8   :  { %2570 = vrcp.f32 %v1245_v27 }
 0x4fa   :  { %v2565_v30 = vpop.eup %2564 }
 0x4fb   :  { %v1263_v32 = vmul.f32 %v2565_v30, %v2849_v31  ;;  %v1251_v36 = vpop.xlane.xlu0 %1250  ;;  %v809_v31 = vshrl.u32 %v738_v41, 16 }
 0x4fc   :  { %v2567_v43 = vpop.eup %2566  ;;  %2572 = vrcp.f32 %v1251_v36 }
 0x4fd   :  { %v1262_v44 = vmul.f32 %v2567_v43, %v2851_v29  ;;  %v1271_v45 = vpack.c.bf16 %v1263_v32, %v1263_v32  ;;  %2574 = vrcp.f32 %v1248_v34  ;;  %v1465_v29 = vsel %vm1279_vm3, %v801_v46, 0 }
 0x4fe   :  { %v2569_v5 = vpop.eup %2568  ;;  %v810_v56 = vpack.i.b16 %v809_v31, %v808_v52 }
 0x4ff   :  { %2454 = vmatmul.mubr.msk.bf16.vlgmr.msra.gmra.mrb[24].mxu0 %vm811_vm2, %v1271_v45  ;;  %v1270_v50 = vpack.c.bf16 %v1262_v44, %v1262_v44  ;;  %v1264_v55 = vmul.f32 %v2569_v5, %v2855_v33 }
 0x500   :  { %2464 = vmatpush3.bf16.msra.mxu0 %v1511_v48  ;;  %2465 = vmatprep.mubr.msk.bf16.mxu0 %vm2607_vm1, %v2606_v15  ;;  %v1603_v57 = vsel %vm1279_vm3, %v810_v56, 0 }
 0x501   :  { %2448 = vmatmul.mubr.msk.bf16.vlgmr.msra.gmra.mrb[20].mxu1 %vm811_vm2, %v1270_v50  ;;  %2475 = vmatprep.subr.bf16.mxu0 %v2606_v15  ;;  %v1272_v51 = vpack.c.bf16 %v1264_v55, %v1264_v55 }
 0x502   :  { %v2571_v53 = vpop.eup %2570  ;;  %2458 = vmatpush3.bf16.msra.mxu1 %v1465_v29  ;;  %2459 = vmatprep.mubr.msk.bf16.mxu1 %vm2607_vm1, %v2606_v15 }
 0x503   :  { %v1265_v7 = vmul.f32 %v2571_v53, %v2863_v37  ;;  %2469 = vmatprep.subr.bf16.mxu1 %v2606_v15  ;;  %v1557_v37 = vsel %vm1279_vm3, %v807_v59, 0 }
 0x505   :  { %v1273_v58 = vpack.c.bf16 %v1265_v7, %v1265_v7 }
 0x506   :  { %v2573_v54 = vpop.eup %2572 }
 0x507   :  { %2466 = vmatmul.mubr.msk.bf16.vlgmr.msra.gmra.mrb[28].mxu0 %vm811_vm2, %v1273_v58  ;;  %v2575_v60 = vpop.eup %2574  ;;  %v1267_v33 = vmul.f32 %v2573_v54, %v2869_v42  ;;  %v2532_v42 = vld [vmem:[%s3091_s4] sm:$0xff]  }
 0x508   :  { %2476 = vmatpush3.bf16.msra.mxu0 %v1603_v57  ;;  %2477 = vmatprep.mubr.msk.bf16.mxu0 %vm2607_vm1, %v2606_v15  ;;  %v1266_v61 = vmul.f32 %v2575_v60, %v2859_v35 }
 0x509   :  { %2460 = vmatmul.mubr.msk.bf16.vlgmr.msra.gmra.mrb[24].mxu1 %vm811_vm2, %v1272_v51  ;;  %2489 = vmatprep.subr.bf16.mxu0 %v2606_v15  ;;  %v1275_v62 = vpack.c.bf16 %v1267_v33, %v1267_v33 }
 0x50a   :  { %2470 = vmatpush3.bf16.msra.mxu1 %v1557_v37  ;;  %2471 = vmatprep.mubr.msk.bf16.mxu1 %vm2607_vm1, %v2606_v15  ;;  %v1274_v63 = vpack.c.bf16 %v1266_v61, %v1266_v61 }
 0x50b   :  { %2481 = vmatprep.subr.bf16.mxu1 %v2606_v15 }
 0x50f   :  { %2478 = vmatmul.mubr.msk.bf16.vlgmr.msra.gmra.mrb[32].mxu0 %vm811_vm2, %v1275_v62 }
 0x510   :  { %2493 = vmatprep.mubr.msk.bf16.mxu0 %vm2607_vm1, %v2606_v15 }
 0x511   :  { %2472 = vmatmul.mubr.msk.bf16.vlgmr.msra.gmra.mrb[28].mxu1 %vm811_vm2, %v1274_v63 }
 0x512   :  { %2485 = vmatprep.mubr.msk.bf16.mxu1 %vm2607_vm1, %v2606_v15  ;;  %2482 = vmatpush3.bf16.msra.mxu1 %v2532_v42 }
 0x513   :  { %2483 = vmatprep.subr.bf16.mxu1 %v2606_v15 }
 0x5ac   :  { %v1317_v35 = vpop.f32.mrb[16].mxu1 }
 0x5ad   :  { %v2437_v0 = vpop.f32.mrb[17].mxu1  ;;  %v1645_v12 = vpack.c.bf16 %v1317_v35, %v1317_v35 }
 0x5ae   :  { %v1320_v2 = vpop.f32.mrb[18].mxu1  ;;  %v1363_v3 = vpop.f32.mrb[20].mxu0 }
 0x5af   :  { %v2438_v4 = vpop.f32.mrb[19].mxu1  ;;  %v2443_v6 = vpop.f32.mrb[21].mxu0  ;;  %v1679_v10 = vpack.c.bf16 %v1363_v3, %v1363_v3  ;;  %v1652_v27 = vrot.slane %v1645_v12, %v2738_v1 }
 0x5b0   :  { %v1366_v8 = vpop.f32.mrb[22].mxu0 }
 0x5b1   :  { %v2444_v9 = vpop.f32.mrb[23].mxu0  ;;  %v1686_v19 = vrot.slane %v1679_v10, %v2738_v1 }
 0x5d2   :  { %v1455_v11 = vpop.f32.mrb[24].mxu0 }
 0x5d3   :  { %v1687_v13 = vpack.c.bf16 %v1455_v11, %v1455_v11  ;;  %v2455_v16 = vpop.f32.mrb[25].mxu0 }
 0x5d4   :  { %v1409_v17 = vpop.f32.mrb[20].mxu1  ;;  %v1458_v18 = vpop.f32.mrb[26].mxu0 }
 0x5d5   :  { %v1694_v21 = vrot.slane %v1687_v13, %v2738_v1  ;;  %v1653_v22 = vpack.c.bf16 %v1409_v17, %v1409_v17  ;;  %v2449_v23 = vpop.f32.mrb[21].mxu1  ;;  %v2456_v25 = vpop.f32.mrb[27].mxu0 }
 0x5d6   :  { %v1412_v26 = vpop.f32.mrb[22].mxu1 }
 0x5d7   :  { %v1695_v28 = vcombine.low %v1686_v19, %v1694_v21  ;;  %v1696_v49 = vcombine.high %v1686_v19, %v1694_v21  ;;  %v1660_v30 = vrot.slane %v1653_v22, %v2738_v1  ;;  %v2450_v32 = vpop.f32.mrb[23].mxu1 }
 0x5d9   :  { %v1703_v34 = vrot.slane %v1695_v28, %v2743_v20  ;;  %v1710_v36 = vrot.slane %v1696_v49, %v2743_v20  ;;  %v1661_v38 = vcombine.low %v1652_v27, %v1660_v30  ;;  %v1662_v41 = vcombine.high %v1652_v27, %v1660_v30 }
 0x5da   :  { %v1547_v43 = vpop.f32.mrb[28].mxu0 }
 0x5db   :  { %v1711_v44 = vcombine.high %v1703_v34, %v2617_v14  ;;  %v2467_v45 = vpop.f32.mrb[29].mxu0  ;;  %v1669_v46 = vrot.slane %v1661_v38, %v2743_v20  ;;  %v1676_v47 = vrot.slane %v1662_v41, %v2743_v20  ;;  %v1712_v31 = vcombine.high %v1710_v36, %v2617_v14 }
 0x5dc   :  { %v1501_v48 = vpop.f32.mrb[24].mxu1  ;;  %v1550_v50 = vpop.f32.mrb[30].mxu0  ;;  %v1786_v5 = vshrl.u32 %v1703_v34, 16  ;;  %v1802_v29 = vshrl.u32 %v1710_v36, 16  ;;  %v1747_v60 = vpack.c.bf16 %v1547_v43, %v1547_v43 }
 0x5dd   :  { %v2461_v52 = vpop.f32.mrb[25].mxu1  ;;  %v2468_v53 = vpop.f32.mrb[31].mxu0  ;;  %v1677_v55 = vcombine.high %v1669_v46, %v2617_v14  ;;  %v1678_v7 = vcombine.high %v1676_v47, %v2617_v14  ;;  %v1783_v56 = vpack.i.b16 %v1703_v34, %v1669_v46  ;;  %v1785_v58 = vshrl.u32 %v1669_v46, 16 }
 0x5de   :  { %v1504_v59 = vpop.f32.mrb[26].mxu1  ;;  %v1794_v54 = vshrl.u32 %v1711_v44, 16  ;;  %v1799_v57 = vpack.i.b16 %v1710_v36, %v1676_v47  ;;  %v1801_v51 = vshrl.u32 %v1676_v47, 16  ;;  %v1810_v42 = vshrl.u32 %v1712_v31, 16 }
 0x5df   :  { %v2462_v33 = vpop.f32.mrb[27].mxu1  ;;  %v1787_v37 = vpack.i.b16 %v1786_v5, %v1785_v58  ;;  %v1791_v61 = vpack.i.b16 %v1711_v44, %v1677_v55  ;;  %v1793_v62 = vshrl.u32 %v1677_v55, 16  ;;  %v1807_v63 = vpack.i.b16 %v1712_v31, %v1678_v7 }
 0x5e0   :  { %v1803_v35 = vpack.i.b16 %v1802_v29, %v1801_v51  ;;  %v1809_v0 = vshrl.u32 %v1678_v7, 16  ;;  %v1845_v2 = vcombine.low %v1783_v56, %v1799_v57  ;;  %v1713_v4 = vpack.c.bf16 %v1501_v48, %v1501_v48 }
 0x5e1   :  { %v1795_v3 = vpack.i.b16 %v1794_v54, %v1793_v62  ;;  %v1853_v8 = vcombine.low %v1791_v61, %v1807_v63  ;;  %v1754_v19 = vrot.slane %v1747_v60, %v2738_v1 }
 0x5e2   :  { %v1639_v6 = vpop.f32.mrb[32].mxu0  ;;  %v1811_v9 = vpack.i.b16 %v1810_v42, %v1809_v0  ;;  %v1895_v12 = vcombine.low %v1787_v37, %v1803_v35  ;;  %v1852_v17 = vrot.slane %v1845_v2, %v2738_v1  ;;  %v1720_v27 = vrot.slane %v1713_v4, %v2738_v1 }
 0x5e3   :  { %v1755_v10 = vpack.c.bf16 %v1639_v6, %v1639_v6  ;;  %v2479_v11 = vpop.f32.mrb[33].mxu0  ;;  %v1860_v18 = vrot.slane %v1853_v8, %v2738_v1  ;;  %v2533_v8 = vld [vmem:[%s3091_s4 + $0x8] sm:$0xff]   ;;  %s2622_s4 = smov 16  }
 0x5e4   :  { %v1593_v13 = vpop.f32.mrb[28].mxu1  ;;  %v1642_v16 = vpop.f32.mrb[34].mxu0  ;;  %v1903_v26 = vcombine.low %v1795_v3, %v1811_v9  ;;  %v1902_v41 = vrot.slane %v1895_v12, %v2738_v1  ;;  %2484 = vmatpush3.bf16.msra.mxu1 %v2533_v8 }
 0x5e5   :  { %v1762_v21 = vrot.slane %v1755_v10, %v2738_v1  ;;  %v1721_v22 = vpack.c.bf16 %v1593_v13, %v1593_v13  ;;  %v2473_v23 = vpop.f32.mrb[29].mxu1  ;;  %v2480_v25 = vpop.f32.mrb[35].mxu0  ;;  %v1877_v49 = vcombine.low %v1852_v17, %v1860_v18  ;;  %2497 = vmatprep.subr.bf16.mxu1 %v2606_v15 }
 0x5e6   :  { %v1596_v28 = vpop.f32.mrb[30].mxu1  ;;  %v1910_v38 = vrot.slane %v1903_v26, %v2738_v1 }
 0x5e7   :  { %v1763_v30 = vcombine.low %v1754_v19, %v1762_v21  ;;  %v1764_v32 = vcombine.high %v1754_v19, %v1762_v21  ;;  %v1728_v34 = vrot.slane %v1721_v22, %v2738_v1  ;;  %v2474_v36 = vpop.f32.mrb[31].mxu1  ;;  %v1884_v11 = vrot.slane %v1877_v49, %v2743_v20 }
 0x5e8   :  { %v1927_v47 = vcombine.low %v1902_v41, %v1910_v38 }
 0x5e9   :  { %v1771_v43 = vrot.slane %v1763_v30, %v2743_v20  ;;  %v1778_v44 = vrot.slane %v1764_v32, %v2743_v20  ;;  %v1729_v45 = vcombine.low %v1720_v27, %v1728_v34  ;;  %v1730_v46 = vcombine.high %v1720_v27, %v1728_v34 }
 0x5ea   :  { %v1934_v18 = vrot.slane %v1927_v47, %v2743_v20 }
 0x5eb   :  { %v1779_v48 = vcombine.high %v1771_v43, %v2617_v14  ;;  %v1737_v50 = vrot.slane %v1729_v45, %v2743_v20  ;;  %v1744_v31 = vrot.slane %v1730_v46, %v2743_v20  ;;  %v1780_v5 = vcombine.high %v1778_v44, %v2617_v14  ;;  %v3019_v45 = vld [vmem:[%s3088_s1] sm:$0x3f] }
 0x5ec   :  { %v1818_v29 = vshrl.u32 %v1771_v43, 16  ;;  %v1834_v58 = vshrl.u32 %v1778_v44, 16 }
 0x5ed   :  { %v1745_v52 = vcombine.high %v1737_v50, %v2617_v14  ;;  %v1746_v53 = vcombine.high %v1744_v31, %v2617_v14  ;;  %v1815_v55 = vpack.i.b16 %v1771_v43, %v1737_v50  ;;  %v1817_v7 = vshrl.u32 %v1737_v50, 16 }
 0x5ee   :  { %v1826_v56 = vshrl.u32 %v1779_v48, 16  ;;  %v1831_v59 = vpack.i.b16 %v1778_v44, %v1744_v31  ;;  %v1833_v54 = vshrl.u32 %v1744_v31, 16  ;;  %v1842_v37 = vshrl.u32 %v1780_v5, 16  ;;  %v2317_v44 = vld [vmem:[%s3092_s5] ss:$0 sm:$0xff] }
 0x5ef   :  { %v1819_v57 = vpack.i.b16 %v1818_v29, %v1817_v7  ;;  %v1823_v51 = vpack.i.b16 %v1779_v48, %v1745_v52  ;;  %v1825_v60 = vshrl.u32 %v1745_v52, 16  ;;  %v1839_v33 = vpack.i.b16 %v1780_v5, %v1746_v53  ;;  %v3025_v31 = vld [vmem:[%s3088_s1 + $0x8] sm:$0x3f] }
 0x5f0   :  { %v1835_v61 = vpack.i.b16 %v1834_v58, %v1833_v54  ;;  %v1841_v62 = vshrl.u32 %v1746_v53, 16  ;;  %v1861_v63 = vcombine.low %v1815_v55, %v1831_v59  ;;  %v2040_v43 = vsub.s32 2, %v2706_v24 }
 0x5f1   :  { %v1827_v42 = vpack.i.b16 %v1826_v56, %v1825_v60  ;;  %v1869_v35 = vcombine.low %v1823_v51, %v1839_v33 }
 0x5f2   :  { %v1843_v0 = vpack.i.b16 %v1842_v37, %v1841_v62  ;;  %v1911_v2 = vcombine.low %v1819_v57, %v1835_v61  ;;  %v1868_v14 = vrot.slane %v1861_v63, %v2738_v1  ;;  %v2041_v46 = vrot.slane %v3019_v45, %v2040_v43 }
 0x5f3   :  { %v1876_v3 = vrot.slane %v1869_v35, %v2738_v1  ;;  %v2045_v5 = vrot.slane %v3025_v31, %v2040_v43  ;;  %v2535_v35 = vld [vmem:[%s3093_s6 + $0x8] sm:$0xff]  }
 0x5f4   :  { %v1919_v4 = vcombine.low %v1827_v42, %v1843_v0  ;;  %v1918_v9 = vrot.slane %v1911_v2, %v2738_v1  ;;  %v2536_v0 = vld [vmem:[%s3095_s8] sm:$0xff]   ;;  %v2537_v2 = vld [vmem:[%s3095_s8 + $0x8] sm:$0xff]  }
 0x5f5   :  { %v1885_v6 = vcombine.low %v1868_v14, %v1876_v3 }
 0x5f6   :  { %v1926_v10 = vrot.slane %v1919_v4, %v2738_v1 }
 0x5f7   :  { %v1892_v12 = vrot.slane %v1885_v6, %v2743_v20 }
 0x5f8   :  { %v1935_v13 = vcombine.low %v1918_v9, %v1926_v10  ;;  %v2078_v10 = vsub.s32 3, %v2706_v24 }
 0x5f9   :  { %v1894_v16 = vcombine.high %v1884_v11, %v1892_v12  ;;  %v1893_v17 = vcombine.low %v1884_v11, %v1892_v12  ;;  %v2088_v12 = vsub.s32 4, %v2706_v24 }
 0x5fa   :  { %v1942_v19 = vrot.slane %v1935_v13, %v2743_v20  ;;  %v2079_v11 = vrot.slane %v3019_v45, %v2078_v10 }
 0x5fb   :  { %v1948_v23 = vshrl.u32 %v1893_v17, 16  ;;  %v1954_v25 = vshrl.u32 %v1894_v16, 16 }
 0x5fc   :  { %v1944_v21 = vcombine.high %v1934_v18, %v1942_v19  ;;  %v1943_v22 = vcombine.low %v1934_v18, %v1942_v19 }
 0x5fe   :  { %v1953_v26 = vpack.i.b16 %v1944_v21, %v1894_v16  ;;  %v1949_v1 = vshrl.u32 %v1943_v22, 16  ;;  %v1955_v27 = vshrl.u32 %v1944_v21, 16  ;;  %v1947_v28 = vpack.i.b16 %v1943_v22, %v1893_v17 }
 0x5ff   :  { %v2083_v17 = vrot.slane %v3025_v31, %v2078_v10  ;;  %v2089_v22 = vrot.slane %v3019_v45, %v2088_v12 }
 0x600   :  { %1959 = vrot.lane.b32.xlu0 %v1953_v26, %s2622_s4  ;;  %v1950_v49 = vpack.i.b16 %v1949_v1, %v1948_v23  ;;  %v1956_v30 = vpack.i.b16 %v1955_v27, %v1954_v25  ;;  %v2093_v23 = vrot.slane %v3025_v31, %v2088_v12 }
 0x602   :  { %1957 = vrot.lane.b32.xlu1 %v1950_v49, %s2623_s18  ;;  %v2539_v49 = vld [vmem:[%s3095_s8 + $0x18] sm:$0xff]  }
 0x606   :  { %1961 = vrot.lane.b32.xlu1 %v1956_v30, %s2624_s19  ;;  %v2321_v30 = vld [vmem:[%s3094_s7] ss:$0 sm:$0xff]  ;;  %s2625_s7 = smov [#allocation2]  }
 0x607   :  { %s2270_s16 = sshll.u32 %s2625_s7, 4  ;;  %s2271_s16 = int_to_ptr.vmem [resolvable:$true] %s2270_s16 }
 0x608   :  { %p2587_p1 = scmp.lt.s32.totalorder %s2271_s16, %s2271_s16 }
 0x672   :  { %v1960_v34 = vpop.permute.xlu0 %1959 }
 0x674   :  { %v1958_v32 = vpop.permute.xlu1 %1957 }
 0x675   :  { %v1965_v20 = vsel %vm811_vm2, %v1947_v28, %v1958_v32  ;;  %v2538_v28 = vld [vmem:[%s3095_s8 + $0x10] sm:$0xff]  }
 0x676   :  { %v1968_v38 = vsel %vm1966_vm4, %v1965_v20, %v1960_v34 }
 0x678   :  { %v1962_v36 = vpop.permute.xlu1 %1961 }
 0x679   :  { %v1971_v41 = vsel %vm1969_vm5, %v1968_v38, %v1962_v36 }
 0x67a   :  { %2486 = vmatmul.mubr.msk.bf16.vlgmr.msra.gmra.mrb[32].mxu1 %vm41_vm0, %v1971_v41 }
 0x67b   :  { %2505 = vmatprep.mubr.msk.bf16.mxu1 %vm2607_vm1, %v2606_v15  ;;  %2498 = vmatpush3.bf16.msra.mxu1 %v2536_v0 }
 0x67c   :  { %2499 = vmatprep.subr.bf16.mxu1 %v2606_v15 }
 0x67f   :  { %2500 = vmatpush3.bf16.msra.mxu1 %v2537_v2 }
 0x680   :  { %2501 = vmatprep.subr.bf16.mxu1 %v2606_v15 }
 0x683   :  { %2502 = vmatpush3.bf16.msra.mxu1 %v2538_v28 }
 0x684   :  { %2503 = vmatprep.subr.bf16.mxu1 %v2606_v15 }
 0x687   :  { %2504 = vmatpush3.bf16.msra.mxu1 %v2539_v49 }
 0x74d   :  { %v2031_v47 = vpop.f32.mrb[32].mxu1 }
 0x74e   :  { %v2032_v48 = vadd.f32 %v2317_v44, %v2031_v47  ;;  %v2487_v50 = vpop.f32.mrb[33].mxu1  ;;  %v2253_v47 = vsub.s32 5, %v2706_v24 }
 0x74f   :  { %v2034_v29 = vpop.f32.mrb[34].mxu1 }
 0x750   :  { %v2046_v52 = vmul.f32 %v2041_v46, %v2032_v48  ;;  %v2035_v53 = vadd.f32 %v2317_v44, %v2034_v29  ;;  %v2488_v55 = vpop.f32.mrb[35].mxu1  ;;  %v2254_v48 = vrot.slane %v3019_v45, %v2253_v47 }
 0x752   :  { %v2047_v7 = vmul.f32 %v2045_v5, %v2035_v53  ;;  %v2048_v56 = vadd.f32 %v2046_v52, %v2716_v39  ;;  %v2258_v52 = vrot.slane %v3025_v31, %v2253_v47 }
 0x754   :  { %v2050_v58 = vsel %vm41_vm0, %v2048_v56, 0.0  ;;  %v2049_v59 = vadd.f32 %v2047_v7, %v2718_v40  ;;  %v2534_v40 = vld [vmem:[%s3093_s6] sm:$0xff]  }
 0x755   :  { %2051 = vadd.xlane.f32.xlu1 %v2050_v58  ;;  %2490 = vmatpush3.bf16.msra.mxu0 %v2534_v40 }
 0x756   :  { %v2053_v54 = vsel %vm41_vm0, %v2049_v59, 0.0  ;;  %2491 = vmatprep.subr.bf16.mxu0 %v2606_v15  ;;  %v2325_v15 = vld [vmem:[%s3096_s9] ss:$0 sm:$0xff]  ;;  %s2582_s9 = scalar_lea.vmem %s2271_s16, 256 }
 0x757   :  { %2054 = vadd.xlane.f32.xlu0 %v2053_v54  ;;  %p2583_p0 = scmp.ne.s32.totalorder %s2271_s16, %s2582_s9  ;;  %p2588_p2 = scmp.lt.s32.totalorder %s2582_s9, %s2582_s9 }
 0x759   :  { %2492 = vmatpush3.bf16.msra.mxu0 %v2535_v35  ;;  %p2589_p3 = por %p2588_p2, %p2587_p1 }
 0x75b   :  { %p2590_p4 = pnand %p2589_p3, %p2583_p0 }
 0x7e2   :  { %v2052_v57 = vpop.xlane.xlu1 %2051 }
 0x7e3   :  { %v2056_v51 = vmul.f32 0.03125, %v2052_v57 }
 0x7e4   :  { %v2055_v60 = vpop.xlane.xlu0 %2054 }
 0x7e5   :  { %v2058_v33 = vsub.f32 %v2048_v56, %v2056_v51  ;;  %v2057_v37 = vmul.f32 0.03125, %v2055_v60 }
 0x7e7   :  { %v2059_v61 = vsub.f32 %v2049_v59, %v2057_v37  ;;  %v2060_v62 = vmul.f32 %v2058_v33, %v2058_v33 }
 0x7e9   :  { %v2062_v63 = vsel %vm41_vm0, %v2060_v62, 0.0  ;;  %v2061_v42 = vmul.f32 %v2059_v61, %v2059_v61 }
 0x7ea   :  { %2063 = vadd.xlane.f32.xlu0 %v2062_v63 }
 0x7eb   :  { %v2065_v39 = vsel %vm41_vm0, %v2061_v42, 0.0 }
 0x7ec   :  { %2066 = vadd.xlane.f32.xlu1 %v2065_v39 }
 0x877   :  { %v2064_v14 = vpop.xlane.xlu0 %2063 }
 0x878   :  { %v2068_v3 = vmul.f32 0.03125, %v2064_v14 }
 0x879   :  { %v2067_v4 = vpop.xlane.xlu1 %2066 }
 0x87a   :  { %v2070_v6 = vadd.f32 1e-05, %v2068_v3  ;;  %v2069_v8 = vmul.f32 0.03125, %v2067_v4 }
 0x87c   :  { %2576 = vrsqrt.f32 %v2070_v6  ;;  %v2071_v9 = vadd.f32 1e-05, %v2069_v8 }
 0x87e   :  { %2578 = vrsqrt.f32 %v2071_v9 }
 0x886   :  { %v2577_v13 = vpop.eup %2576 }
 0x887   :  { %v2074_v16 = vmul.f32 %v2577_v13, %v2058_v33 }
 0x888   :  { %v2579_v18 = vpop.eup %2578 }
 0x889   :  { %v2084_v19 = vmul.f32 %v2079_v11, %v2074_v16  ;;  %v2075_v21 = vmul.f32 %v2579_v18, %v2059_v61 }
 0x88b   :  { %v2085_v25 = vmul.f32 %v2083_v17, %v2075_v21  ;;  %v2094_v26 = vadd.f32 %v2089_v22, %v2084_v19 }
 0x88d   :  { %v2095_v1 = vadd.f32 %v2093_v23, %v2085_v25 }
 0x88f   :  { %v2096_v27 = vpack.c.bf16 %v2095_v1, %v2094_v26 }
 0x891   :  { %2494 = vmatmul.mubr.msk.bf16.vlgmr.msra.gmra.mrb[36].mxu0 %vm41_vm0, %v2096_v27 }
 0x964   :  { %v2157_v32 = vpop.f32.mrb[36].mxu0 }
 0x965   :  { %v2158_v20 = vadd.f32 %v2321_v30, %v2157_v32  ;;  %v2495_v34 = vpop.f32.mrb[37].mxu0 }
 0x966   :  { %v2160_v36 = vpop.f32.mrb[38].mxu0 }
 0x967   :  { %v2161_v38 = vadd.f32 %v2321_v30, %v2160_v36  ;;  %v2496_v41 = vpop.f32.mrb[39].mxu0  ;;  %v2164_v43 = vmax.f32 %v2158_v20, 0.0 }
 0x969   :  { %v2165_v44 = vmax.f32 %v2161_v38, 0.0 }
 0x96b   :  { %v2166_v46 = vpack.c.bf16 %v2165_v44, %v2164_v43 }
 0x96d   :  { %2506 = vmatmul.mubr.msk.bf16.vlgmr.msra.gmra.mrb[36].mxu1 %vm2206_vm6, %v2166_v46 }
 0xa40   :  { %v2244_v50 = vpop.f32.mrb[36].mxu1 }
 0xa41   :  { %v2245_v5 = vadd.f32 %v2325_v15, %v2244_v50  ;;  %v2507_v29 = vpop.f32.mrb[37].mxu1 }
 0xa42   :  { %v2247_v53 = vpop.f32.mrb[38].mxu1 }
 0xa43   :  { %v2259_v55 = vmul.f32 %v2254_v48, %v2245_v5  ;;  %v2248_v7 = vadd.f32 %v2325_v15, %v2247_v53  ;;  %v2508_v56 = vpop.f32.mrb[39].mxu1 }
 0xa45   :  { %v2261_v58 = vadd.f32 %v2259_v55, %v2094_v26  ;;  %v2260_v59 = vmul.f32 %v2258_v52, %v2248_v7 }
 0xa47   :  { %2263 = vst.msk [vmem:[#allocation2] sm:$0xff] %vm41_vm0, %v2261_v58  ;;  %v2262_v24 = vadd.f32 %v2260_v59, %v2095_v1 }
 0xa49   :  { %2264 = vst.msk [vmem:[#allocation2 + $0x8] sm:$0xff] %vm41_vm0, %v2262_v24 }
 0xa4a   :  { %2593 = shalt.err (!%p2590_p4)
}
 0xa4b   :  { %s2594_s4 = scalar_lea.hbm %s3097_s10, 256 }
 0xa4c   :  { %p2595_p5 = scmp.ne.s32.totalorder %s3097_s10, %s2594_s4  ;;  %p2598_p6 = scmp.lt.u32.totalorder %s2594_s4, %s3097_s10 }
 0xa4e   :  { %p2600_p7 = pnand %p2598_p6, %p2595_p5 }
 0xa50   :  { %2603 = shalt.err (!%p2600_p7)
}
 0xa51   :  { %s2626_s22 = smov 128  }
 0xa52   :  { %2276 = dma.vmem_to_hbm [thread:$0]  %s2271_s16, 256, %s3097_s10, [#allocation3], %s2626_s22, %s2626_s22, %s2623_s18  }
 0xa53   :  { %2604 = dma.done.wait [#allocation3], 256  }
 0xa54   :  { %2605 = vsyncadd [#allocation3], 4294967040 }
 0xa55   :  { %2280 = vsyncpa [#allocation3], 1 }

</bundles_post_ra>
